<compile_context>
chip_gen: v7x
topology: tpu7x:2x2x1
jax: 0.10.0
libtpu: 0.0.40
codegen_flags: <defaults>
</compile_context>

<pallas_src>
import jax
import jax.numpy as jnp
import numpy as np
from jax.experimental import pallas as pl
from jax.experimental.pallas import tpu as pltpu


DOT_DTYPE = jnp.bfloat16  # MXU input / kernel-boundary dtype; accumulation is f32.


def _round_up(x, m):
    return (x + m - 1) // m * m


def _tpu_caps():
    """Best-effort hardware probe with safe fallbacks."""
    kind = ""
    try:
        kind = jax.devices()[0].device_kind.lower()
    except Exception:
        pass
    vmem_cap = 64 << 20  # conservative default (v7x-sized)
    try:
        vmem_cap = int(pltpu.get_tpu_info().vmem_capacity_bytes)
    except Exception:
        if any(t in kind for t in ("v4", "v5", "v6")):
            vmem_cap = 128 << 20
    if vmem_cap < (32 << 20):
        vmem_cap = 64 << 20
    multi_core = any(t in kind for t in ("v7", "tpu7", "v4", "v5p"))
    is_v5e = ("v5e" in kind) or ("v5 lite" in kind) or ("v5litepod" in kind)
    return vmem_cap, multi_core, is_v5e


# ----------------------------------------------------------------------------
# Fused Pallas kernel (all TemporalBlocks + final Linear)
# ----------------------------------------------------------------------------
def make_fused_tcn_kernel(b_tile, T, C, O_pad, K, dilations, has_ds, ds_idx,
                          use_concat):
    """Build the fused kernel for fixed static shapes.

    Per grid step: x tile (b_tile, T, C) bf16 -> output tile (b_tile, T, O_pad)
    bf16.  Weights are stacked over layers and stay resident in VMEM (constant
    index_map -> loaded once for the whole grid).
    """
    M = b_tile * T
    L = len(dilations)

    def kernel(x_ref, w1_ref, b1_ref, w2_ref, b2_ref, wd_ref, bd_ref,
               wf_ref, bf_ref, o_ref):
        x = x_ref[...].reshape(M, C).astype(jnp.float32)

        # Hoisted once per kernel invocation: per-row time index within each
        # batch element, plus memoized causal masks keyed by the (static)
        # shift.  Both convs of a layer (and layers sharing shifts) reuse them.
        t_idx = jax.lax.broadcasted_iota(jnp.int32, (M, C), 0) % T
        mask_cache = {}

        def causal_mask(shift):
            if shift not in mask_cache:
                mask_cache[shift] = t_idx >= shift
            return mask_cache[shift]

        def taps(h_f32, h_bf16, dilation):
            # Tap j holds h[t - (K-1-j)*dilation] with causal zero left-pad,
            # cast per-tap to bf16 (roll / compare / select stay in f32).
            out = []
            for j in range(K):
                shift = (K - 1 - j) * dilation            # static python int
                if shift == 0:
                    out.append(h_bf16)
                elif shift >= T:
                    out.append(None)                       # pure left padding
                else:
                    rolled = pltpu.roll(h_f32, shift, axis=0)
                    out.append(jnp.where(causal_mask(shift), rolled,
                                         0.0).astype(DOT_DTYPE))
            return out

        def conv(h_f32, h_bf16, w, bias, dilation):
            tap_list = taps(h_f32, h_bf16, dilation)
            if use_concat:
                # One (M, K*C) x (K*C, C) MXU pass (v6e/v7x 256-deep MXU).
                cols = [t if t is not None else jnp.zeros((M, C), DOT_DTYPE)
                        for t in tap_list]
                y = jnp.dot(jnp.concatenate(cols, axis=-1), w,
                            preferred_element_type=jnp.float32)
            else:
                # v5e: K accumulating 128-deep passes; skip the lane-concat.
                y = None
                for j, t in enumerate(tap_list):
                    if t is None:
                        continue
                    c = jnp.dot(t, w[j * C:(j + 1) * C, :],
                                preferred_element_type=jnp.float32)
                    y = c if y is None else y + c
            return y + bias

        # TODO(synk): for deep stacks (L >= ~6) switch to lax.fori_loop over
        # layers (shapes are uniform after padding) to bound temporary live
        # ranges; static unroll is fine for small L.
        for i in range(L):
            d = dilations[i]
            w1 = w1_ref[i]                          # (K*C, C) bf16
            b1 = b1_ref[i].astype(jnp.float32)      # (1, C)
            w2 = w2_ref[i]                          # (K*C, C) bf16
            b2 = b2_ref[i].astype(jnp.float32)      # (1, C)

            xb = x.astype(DOT_DTYPE)
            if has_ds[i]:
                # 1x1 downsample conv rides the MXU.
                res = jnp.dot(xb, wd_ref[ds_idx[i]],
                              preferred_element_type=jnp.float32)
                res = res + bd_ref[ds_idx[i]].astype(jnp.float32)
            else:
                # Exact f32 identity skip connection (kept off the MXU).
                res = x

            # TODO(synk): nn.Dropout is identity in eval mode; training-mode
            # dropout is not implemented.
            h1 = jnp.maximum(conv(x, xb, w1, b1, d), 0.0)
            h2 = jnp.maximum(conv(h1, h1.astype(DOT_DTYPE), w2, b2, d), 0.0)
            x = jnp.maximum(h2 + res, 0.0)          # relu(out + res)

        yf = jnp.dot(x.astype(DOT_DTYPE), wf_ref[...],
                     preferred_element_type=jnp.float32)
        yf = yf + bf_ref[...].astype(jnp.float32)
        o_ref[...] = yf.reshape(b_tile, T, O_pad).astype(o_ref.dtype)

    return kernel


# ----------------------------------------------------------------------------
# Host wrapper: pad / pack weights, choose tiling, call the kernel
# ----------------------------------------------------------------------------
def fused_tcn_forward(x, block_params, final_w, final_b, kernel_size, *,
                      b_tile=None):
    """x: (B, T, input_size) -> (B, T, output_size), whole TCN in one pallas_call."""
    B, T, c_in = x.shape
    K = kernel_size
    L = len(block_params)
    dilations = tuple(2 ** i for i in range(L))
    chans = [c_in] + [p["w1"].shape[2] for p in block_params]
    O = final_w.shape[1]

    C = _round_up(max(128, max(chans)), 128)   # lane-padded channel width
    O_pad = _round_up(max(128, O), 128)        # lane-dense final output width
    Tp = _round_up(T, 16)                      # M = b_tile*Tp multiple of 16

    vmem_cap, multi_core, is_v5e = _tpu_caps()
    use_concat = not is_v5e                    # v5e: per-tap accumulating dots

    # --- host-side weight packing (padded, stacked over layers) --------------
    w1e = np.zeros((L, K * C, C), np.float32)
    b1e = np.zeros((L, 1, C), np.float32)
    w2e = np.zeros((L, K * C, C), np.float32)
    b2e = np.zeros((L, 1, C), np.float32)
    n_ds = sum(1 for p in block_params if p["wd"] is not None)
    wde = np.zeros((max(1, n_ds), C, C), np.float32)
    bde = np.zeros((max(1, n_ds), 1, C), np.float32)
    has_ds, ds_idx = [], []
    k_ds = 0
    for i, p in enumerate(block_params):
        ci, co = chans[i], chans[i + 1]
        for j in range(K):
            w1e[i, j * C:j * C + ci, :co] = np.asarray(p["w1"][j])
            w2e[i, j * C:j * C + co, :co] = np.asarray(p["w2"][j])
        b1e[i, 0, :co] = np.asarray(p["b1"][0])
        b2e[i, 0, :co] = np.asarray(p["b2"][0])
        if p["wd"] is not None:
            wde[k_ds, :ci, :co] = np.asarray(p["wd"])
            bde[k_ds, 0, :co] = np.asarray(p["bd"][0])
            has_ds.append(True)
            ds_idx.append(k_ds)
            k_ds += 1
        else:
            has_ds.append(False)
            ds_idx.append(0)

    wf_np = np.zeros((C, O_pad), np.float32)
    wf_np[:chans[-1], :O] = np.asarray(final_w)
    bf_np = np.zeros((1, O_pad), np.float32)
    bf_np[0, :O] = np.asarray(final_b[0])

    # --- VMEM budget & batch-tile selection -----------------------------------
    # Headroom: ~51 MiB on 64 MiB parts (v7x), ~102 MiB on 128 MiB parts.
    budget = min(vmem_cap - (12 << 20), int(vmem_cap * 0.8))
    w_bytes_1x = ((w1e.size + w2e.size + wde.size + wf_np.size) * 2
                  + (b1e.size + b2e.size + bde.size + bf_np.size) * 4)

    def footprint(bt, weight_bufs):
        M = bt * Tp
        io = 2 * (M * C + M * O_pad) * 2        # double-buffered bf16 I/O tiles
        tmp = M * K * C * 2                     # stacked taps (bf16)
        tmp += 6 * M * C * 4                    # x/h1/h2/res/y + slack (f32)
        tmp += M * C * 4                        # iota / masks (i32)
        tmp += M * O_pad * 4                    # final f32 accumulator
        return weight_bufs * w_bytes_1x + io + tmp

    if b_tile is None:
        # Target up to ~1024 MXU rows per step, bounded by B and the VMEM
        # budget; split the grid only where a second TensorCore exists.
        bt = max(1, min(1024 // Tp, B))
        if multi_core and B >= 2:
            bt = min(bt, pl.cdiv(B, 2))
        while bt > 1 and footprint(bt, 2) > budget:
            bt -= 1
        b_tile = bt
    Bp = _round_up(B, b_tile)
    grid = (Bp // b_tile,)
    assert Bp % b_tile == 0

    need = footprint(b_tile, 2) + (8 << 20)
    vmem_bytes = int(min(vmem_cap - (4 << 20), max(need, 32 << 20)))

    # --- pad the input (bf16 at the boundary; padded rows/channels are zero) --
    xp = jnp.zeros((Bp, Tp, C), DOT_DTYPE).at[:B, :T, :c_in].set(
        x.astype(DOT_DTYPE))

    w1e_j = jnp.asarray(w1e, DOT_DTYPE)
    w2e_j = jnp.asarray(w2e, DOT_DTYPE)
    wde_j = jnp.asarray(wde, DOT_DTYPE)
    wf_j = jnp.asarray(wf_np, DOT_DTYPE)
    b1e_j = jnp.asarray(b1e, jnp.float32)
    b2e_j = jnp.asarray(b2e, jnp.float32)
    bde_j = jnp.asarray(bde, jnp.float32)
    bf_j = jnp.asarray(bf_np, jnp.float32)

    kernel = make_fused_tcn_kernel(b_tile, Tp, C, O_pad, K, dilations,
                                   tuple(has_ds), tuple(ds_idx), use_concat)

    def _run(single_buffer_weights):
        def wspec(shape):
            nd = len(shape)
            zero = (0,) * nd
            idx = lambda b: zero
            if single_buffer_weights:
                # Grid-invariant weights don't need double buffers.
                return pl.BlockSpec(shape, idx, pipeline_mode=pl.Buffered(1))
            return pl.BlockSpec(shape, idx)

        out = pl.pallas_call(
            kernel,
            out_shape=jax.ShapeDtypeStruct((Bp, Tp, O_pad), DOT_DTYPE),
            grid=grid,
            in_specs=[
                pl.BlockSpec((b_tile, Tp, C), lambda b: (b, 0, 0)),
                wspec(w1e_j.shape), wspec(b1e_j.shape),
                wspec(w2e_j.shape), wspec(b2e_j.shape),
                wspec(wde_j.shape), wspec(bde_j.shape),
                wspec(wf_j.shape), wspec(bf_j.shape),
            ],
            out_specs=pl.BlockSpec((b_tile, Tp, O_pad), lambda b: (b, 0, 0)),
            compiler_params=pltpu.CompilerParams(
                dimension_semantics=("parallel",),
                vmem_limit_bytes=vmem_bytes),
        )(xp, w1e_j, b1e_j, w2e_j, b2e_j, wde_j, bde_j, wf_j, bf_j)
        return jax.block_until_ready(out)

    try:
        out = _run(True)
    except Exception:
        # pipeline_mode=Buffered(1) unsupported on this jax build -> fall back.
        out = _run(False)

    return out[:B, :T, :O].astype(jnp.float32)


# ----------------------------------------------------------------------------
# Pure-JAX reference (correctness sanity check)
# ----------------------------------------------------------------------------
def ref_causal_conv(x, w, b, dilation):
    # x: (B, T, cin), w: (K, cin, cout), b: (1, cout)
    K = w.shape[0]
    T = x.shape[1]
    pad = (K - 1) * dilation
    xp = jnp.pad(x, ((0, 0), (pad, 0), (0, 0)))
    out = jnp.zeros((x.shape[0], T, w.shape[2]), jnp.float32)
    for j in range(K):
        out = out + jnp.einsum("btc,cd->btd",
                               xp[:, j * dilation:j * dilation + T, :], w[j])
    return out + b[None, :, :]


def ref_forward(x, block_params, final_w, final_b, kernel_size):
    out = x
    for i, p in enumerate(block_params):
        d = 2 ** i
        h1 = jax.nn.relu(ref_causal_conv(out, p["w1"], p["b1"], d))
        h2 = jax.nn.relu(ref_causal_conv(h1, p["w2"], p["b2"], d))
        res = out if p["wd"] is None else (
            jnp.einsum("btc,cd->btd", out, p["wd"]) + p["bd"][None, :, :])
        out = jax.nn.relu(h2 + res)
    B, T, C = out.shape
    y = out.reshape(B * T, C) @ final_w + final_b
    return y.reshape(B, T, -1)


# ----------------------------------------------------------------------------
# Main
# ----------------------------------------------------------------------------
if __name__ == "__main__":
    batch = 2
    seq_len = 16
    input_size = 4
    num_channels = [8, 8]   # block 0 has a 1x1 downsample (4->8); block 1 does not
    kernel_size = 3
    output_size = 3

    key = jax.random.PRNGKey(0)
    keys = iter(jax.random.split(key, 32))

    def bf16_round(a):
        # Values are bf16-representable so the kernel (bf16 weights/activations
        # at the boundary) and the f32 reference share exactly the same values.
        return a.astype(jnp.bfloat16).astype(jnp.float32)

    # Input: (B, seq_len, features), matching the PyTorch module's input before
    # its internal NCW transpose.
    x = bf16_round(jax.random.normal(next(keys), (batch, seq_len, input_size),
                                     dtype=jnp.float32))

    # Deterministic synthetic parameters (conv weights ~ N(0, 0.01) like init_weights).
    block_params = []
    c_prev = input_size
    for c_out in num_channels:
        w1 = bf16_round(0.01 * jax.random.normal(next(keys), (kernel_size, c_prev, c_out), jnp.float32))
        b1 = bf16_round(0.01 * jax.random.normal(next(keys), (1, c_out), jnp.float32))
        w2 = bf16_round(0.01 * jax.random.normal(next(keys), (kernel_size, c_out, c_out), jnp.float32))
        b2 = bf16_round(0.01 * jax.random.normal(next(keys), (1, c_out), jnp.float32))
        if c_prev != c_out:
            wd = bf16_round(0.01 * jax.random.normal(next(keys), (c_prev, c_out), jnp.float32))
            bd = bf16_round(0.01 * jax.random.normal(next(keys), (1, c_out), jnp.float32))
        else:
            wd, bd = None, None
        block_params.append(dict(w1=w1, b1=b1, w2=w2, b2=b2, wd=wd, bd=bd))
        c_prev = c_out

    final_w = bf16_round(0.1 * jax.random.normal(next(keys), (num_channels[-1], output_size), jnp.float32))
    final_b = bf16_round(0.1 * jax.random.normal(next(keys), (1, output_size), jnp.float32))

    # Run the fused Pallas TCN.
    out = fused_tcn_forward(x, block_params, final_w, final_b, kernel_size)
    out = jax.block_until_ready(out)
    assert out.shape == (batch, seq_len, output_size), out.shape

    # Sanity check against a pure-JAX f32 reference (kernel uses bf16 MXU inputs
    # and bf16 output with f32 accumulation, hence the modest tolerance).
    ref = ref_forward(x, block_params, final_w, final_b, kernel_size)
    np.testing.assert_allclose(np.asarray(out), np.asarray(ref),
                               rtol=1e-2, atol=2e-3)

    print("KERNEL_OK")
</pallas_src>

<mosaic_0001>
module attributes {stable_mosaic.version = 11 : i64} {
  func.func @kernel(%arg0: i32, %arg1: memref<2x16x128xbf16, #tpu.memory_space<vmem>>, %arg2: memref<2x384x128xbf16, #tpu.memory_space<vmem>>, %arg3: memref<2x1x128xf32, #tpu.memory_space<vmem>>, %arg4: memref<2x384x128xbf16, #tpu.memory_space<vmem>>, %arg5: memref<2x1x128xf32, #tpu.memory_space<vmem>>, %arg6: memref<1x128x128xbf16, #tpu.memory_space<vmem>>, %arg7: memref<1x1x128xf32, #tpu.memory_space<vmem>>, %arg8: memref<128x128xbf16, #tpu.memory_space<vmem>>, %arg9: memref<1x128xf32, #tpu.memory_space<vmem>>, %arg10: memref<2x16x128xbf16, #tpu.memory_space<vmem>>) attributes {dimension_semantics = [#tpu.dimension_semantics<parallel>], iteration_bounds = array<i64: 1>, scalar_prefetch = 0 : i64, scratch_operands = 0 : i64, tpu.core_type = #tpu.core_type<tc>, window_params = [{transform_indices = @transform_0, window_bounds = array<i64: 2, 16, 128>}, {pipeline_mode = #tpu.pipeline_mode<synchronous>, transform_indices = @transform_1, window_bounds = array<i64: 2, 384, 128>}, {pipeline_mode = #tpu.pipeline_mode<synchronous>, transform_indices = @transform_2, window_bounds = array<i64: 2, 1, 128>}, {pipeline_mode = #tpu.pipeline_mode<synchronous>, transform_indices = @transform_3, window_bounds = array<i64: 2, 384, 128>}, {pipeline_mode = #tpu.pipeline_mode<synchronous>, transform_indices = @transform_4, window_bounds = array<i64: 2, 1, 128>}, {pipeline_mode = #tpu.pipeline_mode<synchronous>, transform_indices = @transform_5, window_bounds = array<i64: 1, 128, 128>}, {pipeline_mode = #tpu.pipeline_mode<synchronous>, transform_indices = @transform_6, window_bounds = array<i64: 1, 1, 128>}, {pipeline_mode = #tpu.pipeline_mode<synchronous>, transform_indices = @transform_7, window_bounds = array<i64: 128, 128>}, {pipeline_mode = #tpu.pipeline_mode<synchronous>, transform_indices = @transform_8, window_bounds = array<i64: 1, 128>}, {transform_indices = @transform_9, window_bounds = array<i64: 2, 16, 128>}]} {
    %c0 = arith.constant 0 : index
    %c0_0 = arith.constant 0 : index
    %c0_1 = arith.constant 0 : index
    %0 = vector.load %arg1[%c0, %c0_0, %c0_1] : memref<2x16x128xbf16, #tpu.memory_space<vmem>>, vector<2x16x128xbf16>
    %1 = vector.shape_cast %0 : vector<2x16x128xbf16> to vector<32x128xbf16>
    %2 = arith.extf %1 : vector<32x128xbf16> to vector<32x128xf32>
    %3 = tpu.iota {dimensions = array<i32: 0>} : vector<32x128xi32>
    %c16_i32 = arith.constant 16 : i32
    %c0_i32 = arith.constant 0 : i32
    %4 = arith.cmpi eq, %c16_i32, %c0_i32 : i32
    %c1_i32 = arith.constant 1 : i32
    %5 = arith.select %4, %c1_i32, %c16_i32 : i32
    %6 = vector.broadcast %5 : i32 to vector<32x128xi32>
    %7 = arith.remsi %3, %6 : vector<32x128xi32>
    %c0_i32_2 = arith.constant 0 : i32
    %8 = vector.broadcast %c0_i32_2 : i32 to vector<32x128xi32>
    %9 = arith.cmpi ne, %7, %8 : vector<32x128xi32>
    %c0_i32_3 = arith.constant 0 : i32
    %10 = vector.broadcast %c0_i32_3 : i32 to vector<32x128xi32>
    %11 = arith.cmpi slt, %7, %10 : vector<32x128xi32>
    %c0_i32_4 = arith.constant 0 : i32
    %12 = arith.cmpi slt, %5, %c0_i32_4 : i32
    %13 = vector.broadcast %12 : i1 to vector<32x128xi1>
    %14 = vector.broadcast %13 : vector<32x128xi1> to vector<32x128xi1>
    %15 = arith.xori %11, %14 : vector<32x128xi1>
    %16 = arith.andi %15, %9 : vector<32x128xi1>
    %17 = vector.broadcast %5 : i32 to vector<32x128xi32>
    %18 = arith.addi %7, %17 : vector<32x128xi32>
    %19 = arith.select %16, %18, %7 : vector<32x128xi1>, vector<32x128xi32>
    %c0_5 = arith.constant 0 : index
    %c0_6 = arith.constant 0 : index
    %c0_7 = arith.constant 0 : index
    %20 = vector.load %arg2[%c0_5, %c0_6, %c0_7] : memref<2x384x128xbf16, #tpu.memory_space<vmem>>, vector<1x384x128xbf16>
    %21 = vector.shape_cast %20 : vector<1x384x128xbf16> to vector<384x128xbf16>
    %c0_8 = arith.constant 0 : index
    %c0_9 = arith.constant 0 : index
    %c0_10 = arith.constant 0 : index
    %22 = vector.load %arg3[%c0_8, %c0_9, %c0_10] : memref<2x1x128xf32, #tpu.memory_space<vmem>>, vector<1x1x128xf32>
    %23 = vector.shape_cast %22 : vector<1x1x128xf32> to vector<1x128xf32>
    %c0_11 = arith.constant 0 : index
    %c0_12 = arith.constant 0 : index
    %c0_13 = arith.constant 0 : index
    %24 = vector.load %arg4[%c0_11, %c0_12, %c0_13] : memref<2x384x128xbf16, #tpu.memory_space<vmem>>, vector<1x384x128xbf16>
    %25 = vector.shape_cast %24 : vector<1x384x128xbf16> to vector<384x128xbf16>
    %c0_14 = arith.constant 0 : index
    %c0_15 = arith.constant 0 : index
    %c0_16 = arith.constant 0 : index
    %26 = vector.load %arg5[%c0_14, %c0_15, %c0_16] : memref<2x1x128xf32, #tpu.memory_space<vmem>>, vector<1x1x128xf32>
    %27 = vector.shape_cast %26 : vector<1x1x128xf32> to vector<1x128xf32>
    %28 = arith.truncf %2 : vector<32x128xf32> to vector<32x128xbf16>
    %c0_17 = arith.constant 0 : index
    %c0_18 = arith.constant 0 : index
    %c0_19 = arith.constant 0 : index
    %29 = vector.load %arg6[%c0_17, %c0_18, %c0_19] : memref<1x128x128xbf16, #tpu.memory_space<vmem>>, vector<1x128x128xbf16>
    %30 = vector.shape_cast %29 : vector<1x128x128xbf16> to vector<128x128xbf16>
    %cst = arith.constant dense<0.000000e+00> : vector<32x128xf32>
    %31 = tpu.matmul %28, %30, %cst {dimension_numbers = #tpu.dot_dimension_numbers<[1], [0], [0], [1], [0, 0, 1, 1], [], []>} : vector<32x128xbf16>, vector<128x128xbf16>, vector<32x128xf32> -> vector<32x128xf32>
    %c0_20 = arith.constant 0 : index
    %c0_21 = arith.constant 0 : index
    %c0_22 = arith.constant 0 : index
    %32 = vector.load %arg7[%c0_20, %c0_21, %c0_22] : memref<1x1x128xf32, #tpu.memory_space<vmem>>, vector<1x1x128xf32>
    %33 = vector.shape_cast %32 : vector<1x1x128xf32> to vector<1x128xf32>
    %34 = vector.broadcast %33 : vector<1x128xf32> to vector<32x128xf32>
    %35 = arith.addf %31, %34 : vector<32x128xf32>
    %c2_i32 = arith.constant 2 : i32
    %36 = tpu.dynamic_rotate %2 by %c2_i32 dim 0 : vector<32x128xf32>, i32 -> vector<32x128xf32>
    %c2_i32_23 = arith.constant 2 : i32
    %37 = vector.broadcast %c2_i32_23 : i32 to vector<32x128xi32>
    %38 = arith.cmpi sge, %19, %37 : vector<32x128xi32>
    %cst_24 = arith.constant 0.000000e+00 : f32
    %39 = vector.broadcast %cst_24 : f32 to vector<32x128xf32>
    %40 = arith.select %38, %36, %39 : vector<32x128xi1>, vector<32x128xf32>
    %41 = arith.truncf %40 : vector<32x128xf32> to vector<32x128xbf16>
    %c1_i32_25 = arith.constant 1 : i32
    %42 = tpu.dynamic_rotate %2 by %c1_i32_25 dim 0 : vector<32x128xf32>, i32 -> vector<32x128xf32>
    %c1_i32_26 = arith.constant 1 : i32
    %43 = vector.broadcast %c1_i32_26 : i32 to vector<32x128xi32>
    %44 = arith.cmpi sge, %19, %43 : vector<32x128xi32>
    %cst_27 = arith.constant 0.000000e+00 : f32
    %45 = vector.broadcast %cst_27 : f32 to vector<32x128xf32>
    %46 = arith.select %44, %42, %45 : vector<32x128xi1>, vector<32x128xf32>
    %47 = arith.truncf %46 : vector<32x128xf32> to vector<32x128xbf16>
    %48 = tpu.concatenate %41, %47, %28 in 1 : vector<32x128xbf16>, vector<32x128xbf16>, vector<32x128xbf16> -> vector<32x384xbf16>
    %cst_28 = arith.constant dense<0.000000e+00> : vector<32x128xf32>
    %49 = tpu.matmul %48, %21, %cst_28 {dimension_numbers = #tpu.dot_dimension_numbers<[1], [0], [0], [1], [0, 0, 1, 1], [], []>} : vector<32x384xbf16>, vector<384x128xbf16>, vector<32x128xf32> -> vector<32x128xf32>
    %50 = vector.broadcast %23 : vector<1x128xf32> to vector<32x128xf32>
    %51 = arith.addf %49, %50 : vector<32x128xf32>
    %cst_29 = arith.constant 0.000000e+00 : f32
    %52 = vector.broadcast %cst_29 : f32 to vector<32x128xf32>
    %53 = arith.maximumf %51, %52 : vector<32x128xf32>
    %54 = arith.truncf %53 : vector<32x128xf32> to vector<32x128xbf16>
    %c2_i32_30 = arith.constant 2 : i32
    %55 = tpu.dynamic_rotate %53 by %c2_i32_30 dim 0 : vector<32x128xf32>, i32 -> vector<32x128xf32>
    %cst_31 = arith.constant 0.000000e+00 : f32
    %56 = vector.broadcast %cst_31 : f32 to vector<32x128xf32>
    %57 = arith.select %38, %55, %56 : vector<32x128xi1>, vector<32x128xf32>
    %58 = arith.truncf %57 : vector<32x128xf32> to vector<32x128xbf16>
    %c1_i32_32 = arith.constant 1 : i32
    %59 = tpu.dynamic_rotate %53 by %c1_i32_32 dim 0 : vector<32x128xf32>, i32 -> vector<32x128xf32>
    %cst_33 = arith.constant 0.000000e+00 : f32
    %60 = vector.broadcast %cst_33 : f32 to vector<32x128xf32>
    %61 = arith.select %44, %59, %60 : vector<32x128xi1>, vector<32x128xf32>
    %62 = arith.truncf %61 : vector<32x128xf32> to vector<32x128xbf16>
    %63 = tpu.concatenate %58, %62, %54 in 1 : vector<32x128xbf16>, vector<32x128xbf16>, vector<32x128xbf16> -> vector<32x384xbf16>
    %cst_34 = arith.constant dense<0.000000e+00> : vector<32x128xf32>
    %64 = tpu.matmul %63, %25, %cst_34 {dimension_numbers = #tpu.dot_dimension_numbers<[1], [0], [0], [1], [0, 0, 1, 1], [], []>} : vector<32x384xbf16>, vector<384x128xbf16>, vector<32x128xf32> -> vector<32x128xf32>
    %65 = vector.broadcast %27 : vector<1x128xf32> to vector<32x128xf32>
    %66 = arith.addf %64, %65 : vector<32x128xf32>
    %cst_35 = arith.constant 0.000000e+00 : f32
    %67 = vector.broadcast %cst_35 : f32 to vector<32x128xf32>
    %68 = arith.maximumf %66, %67 : vector<32x128xf32>
    %69 = arith.addf %68, %35 : vector<32x128xf32>
    %cst_36 = arith.constant 0.000000e+00 : f32
    %70 = vector.broadcast %cst_36 : f32 to vector<32x128xf32>
    %71 = arith.maximumf %69, %70 : vector<32x128xf32>
    %c1 = arith.constant 1 : index
    %c0_37 = arith.constant 0 : index
    %c0_38 = arith.constant 0 : index
    %72 = vector.load %arg2[%c1, %c0_37, %c0_38] : memref<2x384x128xbf16, #tpu.memory_space<vmem>>, vector<1x384x128xbf16>
    %73 = vector.shape_cast %72 : vector<1x384x128xbf16> to vector<384x128xbf16>
    %c1_39 = arith.constant 1 : index
    %c0_40 = arith.constant 0 : index
    %c0_41 = arith.constant 0 : index
    %74 = vector.load %arg3[%c1_39, %c0_40, %c0_41] : memref<2x1x128xf32, #tpu.memory_space<vmem>>, vector<1x1x128xf32>
    %75 = vector.shape_cast %74 : vector<1x1x128xf32> to vector<1x128xf32>
    %c1_42 = arith.constant 1 : index
    %c0_43 = arith.constant 0 : index
    %c0_44 = arith.constant 0 : index
    %76 = vector.load %arg4[%c1_42, %c0_43, %c0_44] : memref<2x384x128xbf16, #tpu.memory_space<vmem>>, vector<1x384x128xbf16>
    %77 = vector.shape_cast %76 : vector<1x384x128xbf16> to vector<384x128xbf16>
    %c1_45 = arith.constant 1 : index
    %c0_46 = arith.constant 0 : index
    %c0_47 = arith.constant 0 : index
    %78 = vector.load %arg5[%c1_45, %c0_46, %c0_47] : memref<2x1x128xf32, #tpu.memory_space<vmem>>, vector<1x1x128xf32>
    %79 = vector.shape_cast %78 : vector<1x1x128xf32> to vector<1x128xf32>
    %80 = arith.truncf %71 : vector<32x128xf32> to vector<32x128xbf16>
    %c4_i32 = arith.constant 4 : i32
    %81 = tpu.dynamic_rotate %71 by %c4_i32 dim 0 : vector<32x128xf32>, i32 -> vector<32x128xf32>
    %c4_i32_48 = arith.constant 4 : i32
    %82 = vector.broadcast %c4_i32_48 : i32 to vector<32x128xi32>
    %83 = arith.cmpi sge, %19, %82 : vector<32x128xi32>
    %cst_49 = arith.constant 0.000000e+00 : f32
    %84 = vector.broadcast %cst_49 : f32 to vector<32x128xf32>
    %85 = arith.select %83, %81, %84 : vector<32x128xi1>, vector<32x128xf32>
    %86 = arith.truncf %85 : vector<32x128xf32> to vector<32x128xbf16>
    %c2_i32_50 = arith.constant 2 : i32
    %87 = tpu.dynamic_rotate %71 by %c2_i32_50 dim 0 : vector<32x128xf32>, i32 -> vector<32x128xf32>
    %cst_51 = arith.constant 0.000000e+00 : f32
    %88 = vector.broadcast %cst_51 : f32 to vector<32x128xf32>
    %89 = arith.select %38, %87, %88 : vector<32x128xi1>, vector<32x128xf32>
    %90 = arith.truncf %89 : vector<32x128xf32> to vector<32x128xbf16>
    %91 = tpu.concatenate %86, %90, %80 in 1 : vector<32x128xbf16>, vector<32x128xbf16>, vector<32x128xbf16> -> vector<32x384xbf16>
    %cst_52 = arith.constant dense<0.000000e+00> : vector<32x128xf32>
    %92 = tpu.matmul %91, %73, %cst_52 {dimension_numbers = #tpu.dot_dimension_numbers<[1], [0], [0], [1], [0, 0, 1, 1], [], []>} : vector<32x384xbf16>, vector<384x128xbf16>, vector<32x128xf32> -> vector<32x128xf32>
    %93 = vector.broadcast %75 : vector<1x128xf32> to vector<32x128xf32>
    %94 = arith.addf %92, %93 : vector<32x128xf32>
    %cst_53 = arith.constant 0.000000e+00 : f32
    %95 = vector.broadcast %cst_53 : f32 to vector<32x128xf32>
    %96 = arith.maximumf %94, %95 : vector<32x128xf32>
    %97 = arith.truncf %96 : vector<32x128xf32> to vector<32x128xbf16>
    %c4_i32_54 = arith.constant 4 : i32
    %98 = tpu.dynamic_rotate %96 by %c4_i32_54 dim 0 : vector<32x128xf32>, i32 -> vector<32x128xf32>
    %cst_55 = arith.constant 0.000000e+00 : f32
    %99 = vector.broadcast %cst_55 : f32 to vector<32x128xf32>
    %100 = arith.select %83, %98, %99 : vector<32x128xi1>, vector<32x128xf32>
    %101 = arith.truncf %100 : vector<32x128xf32> to vector<32x128xbf16>
    %c2_i32_56 = arith.constant 2 : i32
    %102 = tpu.dynamic_rotate %96 by %c2_i32_56 dim 0 : vector<32x128xf32>, i32 -> vector<32x128xf32>
    %cst_57 = arith.constant 0.000000e+00 : f32
    %103 = vector.broadcast %cst_57 : f32 to vector<32x128xf32>
    %104 = arith.select %38, %102, %103 : vector<32x128xi1>, vector<32x128xf32>
    %105 = arith.truncf %104 : vector<32x128xf32> to vector<32x128xbf16>
    %106 = tpu.concatenate %101, %105, %97 in 1 : vector<32x128xbf16>, vector<32x128xbf16>, vector<32x128xbf16> -> vector<32x384xbf16>
    %cst_58 = arith.constant dense<0.000000e+00> : vector<32x128xf32>
    %107 = tpu.matmul %106, %77, %cst_58 {dimension_numbers = #tpu.dot_dimension_numbers<[1], [0], [0], [1], [0, 0, 1, 1], [], []>} : vector<32x384xbf16>, vector<384x128xbf16>, vector<32x128xf32> -> vector<32x128xf32>
    %108 = vector.broadcast %79 : vector<1x128xf32> to vector<32x128xf32>
    %109 = arith.addf %107, %108 : vector<32x128xf32>
    %cst_59 = arith.constant 0.000000e+00 : f32
    %110 = vector.broadcast %cst_59 : f32 to vector<32x128xf32>
    %111 = arith.maximumf %109, %110 : vector<32x128xf32>
    %112 = arith.addf %111, %71 : vector<32x128xf32>
    %cst_60 = arith.constant 0.000000e+00 : f32
    %113 = vector.broadcast %cst_60 : f32 to vector<32x128xf32>
    %114 = arith.maximumf %112, %113 : vector<32x128xf32>
    %115 = arith.truncf %114 : vector<32x128xf32> to vector<32x128xbf16>
    %c0_61 = arith.constant 0 : index
    %c0_62 = arith.constant 0 : index
    %116 = vector.load %arg8[%c0_61, %c0_62] : memref<128x128xbf16, #tpu.memory_space<vmem>>, vector<128x128xbf16>
    %cst_63 = arith.constant dense<0.000000e+00> : vector<32x128xf32>
    %117 = tpu.matmul %115, %116, %cst_63 {dimension_numbers = #tpu.dot_dimension_numbers<[1], [0], [0], [1], [0, 0, 1, 1], [], []>} : vector<32x128xbf16>, vector<128x128xbf16>, vector<32x128xf32> -> vector<32x128xf32>
    %c0_64 = arith.constant 0 : index
    %c0_65 = arith.constant 0 : index
    %118 = vector.load %arg9[%c0_64, %c0_65] : memref<1x128xf32, #tpu.memory_space<vmem>>, vector<1x128xf32>
    %119 = vector.broadcast %118 : vector<1x128xf32> to vector<32x128xf32>
    %120 = arith.addf %117, %119 : vector<32x128xf32>
    %121 = vector.shape_cast %120 : vector<32x128xf32> to vector<2x16x128xf32>
    %122 = arith.truncf %121 : vector<2x16x128xf32> to vector<2x16x128xbf16>
    %c0_66 = arith.constant 0 : index
    %c0_67 = arith.constant 0 : index
    %c0_68 = arith.constant 0 : index
    %123 = vector.load %arg10[%c0_66, %c0_67, %c0_68] : memref<2x16x128xbf16, #tpu.memory_space<vmem>>, vector<2x16x128xbf16>
    tpu.vector_store %arg10[%c0_66, %c0_67, %c0_68], %122 {strides = array<i32>} : memref<2x16x128xbf16, #tpu.memory_space<vmem>>, vector<2x16x128xbf16>,
    return
  }
  func.func @transform_0(%arg0: i32) -> (i32, i32, i32) {
    %c0_i32 = arith.constant 0 : i32
    %c0_i32_0 = arith.constant 0 : i32
    %c0_i32_1 = arith.constant 0 : i32
    return %arg0, %c0_i32, %c0_i32_0 : i32, i32, i32
  }
  func.func @transform_1(%arg0: i32) -> (i32, i32, i32) {
    %c0_i32 = arith.constant 0 : i32
    %c0_i32_0 = arith.constant 0 : i32
    %c0_i32_1 = arith.constant 0 : i32
    %c0_i32_2 = arith.constant 0 : i32
    return %c0_i32, %c0_i32_0, %c0_i32_1 : i32, i32, i32
  }
  func.func @transform_2(%arg0: i32) -> (i32, i32, i32) {
    %c0_i32 = arith.constant 0 : i32
    %c0_i32_0 = arith.constant 0 : i32
    %c0_i32_1 = arith.constant 0 : i32
    %c0_i32_2 = arith.constant 0 : i32
    return %c0_i32, %c0_i32_0, %c0_i32_1 : i32, i32, i32
  }
  func.func @transform_3(%arg0: i32) -> (i32, i32, i32) {
    %c0_i32 = arith.constant 0 : i32
    %c0_i32_0 = arith.constant 0 : i32
    %c0_i32_1 = arith.constant 0 : i32
    %c0_i32_2 = arith.constant 0 : i32
    return %c0_i32, %c0_i32_0, %c0_i32_1 : i32, i32, i32
  }
  func.func @transform_4(%arg0: i32) -> (i32, i32, i32) {
    %c0_i32 = arith.constant 0 : i32
    %c0_i32_0 = arith.constant 0 : i32
    %c0_i32_1 = arith.constant 0 : i32
    %c0_i32_2 = arith.constant 0 : i32
    return %c0_i32, %c0_i32_0, %c0_i32_1 : i32, i32, i32
  }
  func.func @transform_5(%arg0: i32) -> (i32, i32, i32) {
    %c0_i32 = arith.constant 0 : i32
    %c0_i32_0 = arith.constant 0 : i32
    %c0_i32_1 = arith.constant 0 : i32
    %c0_i32_2 = arith.constant 0 : i32
    return %c0_i32, %c0_i32_0, %c0_i32_1 : i32, i32, i32
  }
  func.func @transform_6(%arg0: i32) -> (i32, i32, i32) {
    %c0_i32 = arith.constant 0 : i32
    %c0_i32_0 = arith.constant 0 : i32
    %c0_i32_1 = arith.constant 0 : i32
    %c0_i32_2 = arith.constant 0 : i32
    return %c0_i32, %c0_i32_0, %c0_i32_1 : i32, i32, i32
  }
  func.func @transform_7(%arg0: i32) -> (i32, i32) {
    %c0_i32 = arith.constant 0 : i32
    %c0_i32_0 = arith.constant 0 : i32
    %c0_i32_1 = arith.constant 0 : i32
    return %c0_i32, %c0_i32_0 : i32, i32
  }
  func.func @transform_8(%arg0: i32) -> (i32, i32) {
    %c0_i32 = arith.constant 0 : i32
    %c0_i32_0 = arith.constant 0 : i32
    %c0_i32_1 = arith.constant 0 : i32
    return %c0_i32, %c0_i32_0 : i32, i32
  }
  func.func @transform_9(%arg0: i32) -> (i32, i32, i32) {
    %c0_i32 = arith.constant 0 : i32
    %c0_i32_0 = arith.constant 0 : i32
    %c0_i32_1 = arith.constant 0 : i32
    return %arg0, %c0_i32, %c0_i32_0 : i32, i32, i32
  }
}

module attributes {stable_mosaic.version = 11 : i64} {
  func.func @kernel(%arg0: i32, %arg1: memref<2x16x128xbf16, #tpu.memory_space<vmem>>, %arg2: memref<2x384x128xbf16, #tpu.memory_space<vmem>>, %arg3: memref<2x1x128xf32, #tpu.memory_space<vmem>>, %arg4: memref<2x384x128xbf16, #tpu.memory_space<vmem>>, %arg5: memref<2x1x128xf32, #tpu.memory_space<vmem>>, %arg6: memref<1x128x128xbf16, #tpu.memory_space<vmem>>, %arg7: memref<1x1x128xf32, #tpu.memory_space<vmem>>, %arg8: memref<128x128xbf16, #tpu.memory_space<vmem>>, %arg9: memref<1x128xf32, #tpu.memory_space<vmem>>, %arg10: memref<2x16x128xbf16, #tpu.memory_space<vmem>>) attributes {dimension_semantics = [#tpu.dimension_semantics<parallel>], iteration_bounds = array<i64: 1>, scalar_prefetch = 0 : i64, scratch_operands = 0 : i64, tpu.core_type = #tpu.core_type<tc>, window_params = [{transform_indices = @transform_0, window_bounds = array<i64: 2, 16, 128>}, {pipeline_mode = #tpu.pipeline_mode<synchronous>, transform_indices = @transform_1, window_bounds = array<i64: 2, 384, 128>}, {pipeline_mode = #tpu.pipeline_mode<synchronous>, transform_indices = @transform_2, window_bounds = array<i64: 2, 1, 128>}, {pipeline_mode = #tpu.pipeline_mode<synchronous>, transform_indices = @transform_3, window_bounds = array<i64: 2, 384, 128>}, {pipeline_mode = #tpu.pipeline_mode<synchronous>, transform_indices = @transform_4, window_bounds = array<i64: 2, 1, 128>}, {pipeline_mode = #tpu.pipeline_mode<synchronous>, transform_indices = @transform_5, window_bounds = array<i64: 1, 128, 128>}, {pipeline_mode = #tpu.pipeline_mode<synchronous>, transform_indices = @transform_6, window_bounds = array<i64: 1, 1, 128>}, {pipeline_mode = #tpu.pipeline_mode<synchronous>, transform_indices = @transform_7, window_bounds = array<i64: 128, 128>}, {pipeline_mode = #tpu.pipeline_mode<synchronous>, transform_indices = @transform_8, window_bounds = array<i64: 1, 128>}, {transform_indices = @transform_9, window_bounds = array<i64: 2, 16, 128>}]} {
    %c0 = arith.constant 0 : index
    %c0_0 = arith.constant 0 : index
    %c0_1 = arith.constant 0 : index
    %0 = vector.load %arg1[%c0, %c0_0, %c0_1] : memref<2x16x128xbf16, #tpu.memory_space<vmem>>, vector<2x16x128xbf16>
    %1 = vector.shape_cast %0 : vector<2x16x128xbf16> to vector<32x128xbf16>
    %2 = arith.extf %1 : vector<32x128xbf16> to vector<32x128xf32>
    %3 = tpu.iota {dimensions = array<i32: 0>} : vector<32x128xi32>
    %c16_i32 = arith.constant 16 : i32
    %c0_i32 = arith.constant 0 : i32
    %4 = arith.cmpi eq, %c16_i32, %c0_i32 : i32
    %c1_i32 = arith.constant 1 : i32
    %5 = arith.select %4, %c1_i32, %c16_i32 : i32
    %6 = vector.broadcast %5 : i32 to vector<32x128xi32>
    %7 = arith.remsi %3, %6 : vector<32x128xi32>
    %c0_i32_2 = arith.constant 0 : i32
    %8 = vector.broadcast %c0_i32_2 : i32 to vector<32x128xi32>
    %9 = arith.cmpi ne, %7, %8 : vector<32x128xi32>
    %c0_i32_3 = arith.constant 0 : i32
    %10 = vector.broadcast %c0_i32_3 : i32 to vector<32x128xi32>
    %11 = arith.cmpi slt, %7, %10 : vector<32x128xi32>
    %c0_i32_4 = arith.constant 0 : i32
    %12 = arith.cmpi slt, %5, %c0_i32_4 : i32
    %13 = vector.broadcast %12 : i1 to vector<32x128xi1>
    %14 = vector.broadcast %13 : vector<32x128xi1> to vector<32x128xi1>
    %15 = arith.xori %11, %14 : vector<32x128xi1>
    %16 = arith.andi %15, %9 : vector<32x128xi1>
    %17 = vector.broadcast %5 : i32 to vector<32x128xi32>
    %18 = arith.addi %7, %17 : vector<32x128xi32>
    %19 = arith.select %16, %18, %7 : vector<32x128xi1>, vector<32x128xi32>
    %c0_5 = arith.constant 0 : index
    %c0_6 = arith.constant 0 : index
    %c0_7 = arith.constant 0 : index
    %20 = vector.load %arg2[%c0_5, %c0_6, %c0_7] : memref<2x384x128xbf16, #tpu.memory_space<vmem>>, vector<1x384x128xbf16>
    %21 = vector.shape_cast %20 : vector<1x384x128xbf16> to vector<384x128xbf16>
    %c0_8 = arith.constant 0 : index
    %c0_9 = arith.constant 0 : index
    %c0_10 = arith.constant 0 : index
    %22 = vector.load %arg3[%c0_8, %c0_9, %c0_10] : memref<2x1x128xf32, #tpu.memory_space<vmem>>, vector<1x1x128xf32>
    %23 = vector.shape_cast %22 : vector<1x1x128xf32> to vector<1x128xf32>
    %c0_11 = arith.constant 0 : index
    %c0_12 = arith.constant 0 : index
    %c0_13 = arith.constant 0 : index
    %24 = vector.load %arg4[%c0_11, %c0_12, %c0_13] : memref<2x384x128xbf16, #tpu.memory_space<vmem>>, vector<1x384x128xbf16>
    %25 = vector.shape_cast %24 : vector<1x384x128xbf16> to vector<384x128xbf16>
    %c0_14 = arith.constant 0 : index
    %c0_15 = arith.constant 0 : index
    %c0_16 = arith.constant 0 : index
    %26 = vector.load %arg5[%c0_14, %c0_15, %c0_16] : memref<2x1x128xf32, #tpu.memory_space<vmem>>, vector<1x1x128xf32>
    %27 = vector.shape_cast %26 : vector<1x1x128xf32> to vector<1x128xf32>
    %28 = arith.truncf %2 : vector<32x128xf32> to vector<32x128xbf16>
    %c0_17 = arith.constant 0 : index
    %c0_18 = arith.constant 0 : index
    %c0_19 = arith.constant 0 : index
    %29 = vector.load %arg6[%c0_17, %c0_18, %c0_19] : memref<1x128x128xbf16, #tpu.memory_space<vmem>>, vector<1x128x128xbf16>
    %30 = vector.shape_cast %29 : vector<1x128x128xbf16> to vector<128x128xbf16>
    %cst = arith.constant dense<0.000000e+00> : vector<32x128xf32>
    %31 = tpu.matmul %28, %30, %cst {dimension_numbers = #tpu.dot_dimension_numbers<[1], [0], [0], [1], [0, 0, 1, 1], [], []>} : vector<32x128xbf16>, vector<128x128xbf16>, vector<32x128xf32> -> vector<32x128xf32>
    %c0_20 = arith.constant 0 : index
    %c0_21 = arith.constant 0 : index
    %c0_22 = arith.constant 0 : index
    %32 = vector.load %arg7[%c0_20, %c0_21, %c0_22] : memref<1x1x128xf32, #tpu.memory_space<vmem>>, vector<1x1x128xf32>
    %33 = vector.shape_cast %32 : vector<1x1x128xf32> to vector<1x128xf32>
    %34 = vector.broadcast %33 : vector<1x128xf32> to vector<32x128xf32>
    %35 = arith.addf %31, %34 : vector<32x128xf32>
    %c2_i32 = arith.constant 2 : i32
    %36 = tpu.dynamic_rotate %2 by %c2_i32 dim 0 : vector<32x128xf32>, i32 -> vector<32x128xf32>
    %c2_i32_23 = arith.constant 2 : i32
    %37 = vector.broadcast %c2_i32_23 : i32 to vector<32x128xi32>
    %38 = arith.cmpi sge, %19, %37 : vector<32x128xi32>
    %cst_24 = arith.constant 0.000000e+00 : f32
    %39 = vector.broadcast %cst_24 : f32 to vector<32x128xf32>
    %40 = arith.select %38, %36, %39 : vector<32x128xi1>, vector<32x128xf32>
    %41 = arith.truncf %40 : vector<32x128xf32> to vector<32x128xbf16>
    %c1_i32_25 = arith.constant 1 : i32
    %42 = tpu.dynamic_rotate %2 by %c1_i32_25 dim 0 : vector<32x128xf32>, i32 -> vector<32x128xf32>
    %c1_i32_26 = arith.constant 1 : i32
    %43 = vector.broadcast %c1_i32_26 : i32 to vector<32x128xi32>
    %44 = arith.cmpi sge, %19, %43 : vector<32x128xi32>
    %cst_27 = arith.constant 0.000000e+00 : f32
    %45 = vector.broadcast %cst_27 : f32 to vector<32x128xf32>
    %46 = arith.select %44, %42, %45 : vector<32x128xi1>, vector<32x128xf32>
    %47 = arith.truncf %46 : vector<32x128xf32> to vector<32x128xbf16>
    %48 = tpu.concatenate %41, %47, %28 in 1 : vector<32x128xbf16>, vector<32x128xbf16>, vector<32x128xbf16> -> vector<32x384xbf16>
    %cst_28 = arith.constant dense<0.000000e+00> : vector<32x128xf32>
    %49 = tpu.matmul %48, %21, %cst_28 {dimension_numbers = #tpu.dot_dimension_numbers<[1], [0], [0], [1], [0, 0, 1, 1], [], []>} : vector<32x384xbf16>, vector<384x128xbf16>, vector<32x128xf32> -> vector<32x128xf32>
    %50 = vector.broadcast %23 : vector<1x128xf32> to vector<32x128xf32>
    %51 = arith.addf %49, %50 : vector<32x128xf32>
    %cst_29 = arith.constant 0.000000e+00 : f32
    %52 = vector.broadcast %cst_29 : f32 to vector<32x128xf32>
    %53 = arith.maximumf %51, %52 : vector<32x128xf32>
    %54 = arith.truncf %53 : vector<32x128xf32> to vector<32x128xbf16>
    %c2_i32_30 = arith.constant 2 : i32
    %55 = tpu.dynamic_rotate %53 by %c2_i32_30 dim 0 : vector<32x128xf32>, i32 -> vector<32x128xf32>
    %cst_31 = arith.constant 0.000000e+00 : f32
    %56 = vector.broadcast %cst_31 : f32 to vector<32x128xf32>
    %57 = arith.select %38, %55, %56 : vector<32x128xi1>, vector<32x128xf32>
    %58 = arith.truncf %57 : vector<32x128xf32> to vector<32x128xbf16>
    %c1_i32_32 = arith.constant 1 : i32
    %59 = tpu.dynamic_rotate %53 by %c1_i32_32 dim 0 : vector<32x128xf32>, i32 -> vector<32x128xf32>
    %cst_33 = arith.constant 0.000000e+00 : f32
    %60 = vector.broadcast %cst_33 : f32 to vector<32x128xf32>
    %61 = arith.select %44, %59, %60 : vector<32x128xi1>, vector<32x128xf32>
    %62 = arith.truncf %61 : vector<32x128xf32> to vector<32x128xbf16>
    %63 = tpu.concatenate %58, %62, %54 in 1 : vector<32x128xbf16>, vector<32x128xbf16>, vector<32x128xbf16> -> vector<32x384xbf16>
    %cst_34 = arith.constant dense<0.000000e+00> : vector<32x128xf32>
    %64 = tpu.matmul %63, %25, %cst_34 {dimension_numbers = #tpu.dot_dimension_numbers<[1], [0], [0], [1], [0, 0, 1, 1], [], []>} : vector<32x384xbf16>, vector<384x128xbf16>, vector<32x128xf32> -> vector<32x128xf32>
    %65 = vector.broadcast %27 : vector<1x128xf32> to vector<32x128xf32>
    %66 = arith.addf %64, %65 : vector<32x128xf32>
    %cst_35 = arith.constant 0.000000e+00 : f32
    %67 = vector.broadcast %cst_35 : f32 to vector<32x128xf32>
    %68 = arith.maximumf %66, %67 : vector<32x128xf32>
    %69 = arith.addf %68, %35 : vector<32x128xf32>
    %cst_36 = arith.constant 0.000000e+00 : f32
    %70 = vector.broadcast %cst_36 : f32 to vector<32x128xf32>
    %71 = arith.maximumf %69, %70 : vector<32x128xf32>
    %c1 = arith.constant 1 : index
    %c0_37 = arith.constant 0 : index
    %c0_38 = arith.constant 0 : index
    %72 = vector.load %arg2[%c1, %c0_37, %c0_38] : memref<2x384x128xbf16, #tpu.memory_space<vmem>>, vector<1x384x128xbf16>
    %73 = vector.shape_cast %72 : vector<1x384x128xbf16> to vector<384x128xbf16>
    %c1_39 = arith.constant 1 : index
    %c0_40 = arith.constant 0 : index
    %c0_41 = arith.constant 0 : index
    %74 = vector.load %arg3[%c1_39, %c0_40, %c0_41] : memref<2x1x128xf32, #tpu.memory_space<vmem>>, vector<1x1x128xf32>
    %75 = vector.shape_cast %74 : vector<1x1x128xf32> to vector<1x128xf32>
    %c1_42 = arith.constant 1 : index
    %c0_43 = arith.constant 0 : index
    %c0_44 = arith.constant 0 : index
    %76 = vector.load %arg4[%c1_42, %c0_43, %c0_44] : memref<2x384x128xbf16, #tpu.memory_space<vmem>>, vector<1x384x128xbf16>
    %77 = vector.shape_cast %76 : vector<1x384x128xbf16> to vector<384x128xbf16>
    %c1_45 = arith.constant 1 : index
    %c0_46 = arith.constant 0 : index
    %c0_47 = arith.constant 0 : index
    %78 = vector.load %arg5[%c1_45, %c0_46, %c0_47] : memref<2x1x128xf32, #tpu.memory_space<vmem>>, vector<1x1x128xf32>
    %79 = vector.shape_cast %78 : vector<1x1x128xf32> to vector<1x128xf32>
    %80 = arith.truncf %71 : vector<32x128xf32> to vector<32x128xbf16>
    %c4_i32 = arith.constant 4 : i32
    %81 = tpu.dynamic_rotate %71 by %c4_i32 dim 0 : vector<32x128xf32>, i32 -> vector<32x128xf32>
    %c4_i32_48 = arith.constant 4 : i32
    %82 = vector.broadcast %c4_i32_48 : i32 to vector<32x128xi32>
    %83 = arith.cmpi sge, %19, %82 : vector<32x128xi32>
    %cst_49 = arith.constant 0.000000e+00 : f32
    %84 = vector.broadcast %cst_49 : f32 to vector<32x128xf32>
    %85 = arith.select %83, %81, %84 : vector<32x128xi1>, vector<32x128xf32>
    %86 = arith.truncf %85 : vector<32x128xf32> to vector<32x128xbf16>
    %c2_i32_50 = arith.constant 2 : i32
    %87 = tpu.dynamic_rotate %71 by %c2_i32_50 dim 0 : vector<32x128xf32>, i32 -> vector<32x128xf32>
    %cst_51 = arith.constant 0.000000e+00 : f32
    %88 = vector.broadcast %cst_51 : f32 to vector<32x128xf32>
    %89 = arith.select %38, %87, %88 : vector<32x128xi1>, vector<32x128xf32>
    %90 = arith.truncf %89 : vector<32x128xf32> to vector<32x128xbf16>
    %91 = tpu.concatenate %86, %90, %80 in 1 : vector<32x128xbf16>, vector<32x128xbf16>, vector<32x128xbf16> -> vector<32x384xbf16>
    %cst_52 = arith.constant dense<0.000000e+00> : vector<32x128xf32>
    %92 = tpu.matmul %91, %73, %cst_52 {dimension_numbers = #tpu.dot_dimension_numbers<[1], [0], [0], [1], [0, 0, 1, 1], [], []>} : vector<32x384xbf16>, vector<384x128xbf16>, vector<32x128xf32> -> vector<32x128xf32>
    %93 = vector.broadcast %75 : vector<1x128xf32> to vector<32x128xf32>
    %94 = arith.addf %92, %93 : vector<32x128xf32>
    %cst_53 = arith.constant 0.000000e+00 : f32
    %95 = vector.broadcast %cst_53 : f32 to vector<32x128xf32>
    %96 = arith.maximumf %94, %95 : vector<32x128xf32>
    %97 = arith.truncf %96 : vector<32x128xf32> to vector<32x128xbf16>
    %c4_i32_54 = arith.constant 4 : i32
    %98 = tpu.dynamic_rotate %96 by %c4_i32_54 dim 0 : vector<32x128xf32>, i32 -> vector<32x128xf32>
    %cst_55 = arith.constant 0.000000e+00 : f32
    %99 = vector.broadcast %cst_55 : f32 to vector<32x128xf32>
    %100 = arith.select %83, %98, %99 : vector<32x128xi1>, vector<32x128xf32>
    %101 = arith.truncf %100 : vector<32x128xf32> to vector<32x128xbf16>
    %c2_i32_56 = arith.constant 2 : i32
    %102 = tpu.dynamic_rotate %96 by %c2_i32_56 dim 0 : vector<32x128xf32>, i32 -> vector<32x128xf32>
    %cst_57 = arith.constant 0.000000e+00 : f32
    %103 = vector.broadcast %cst_57 : f32 to vector<32x128xf32>
    %104 = arith.select %38, %102, %103 : vector<32x128xi1>, vector<32x128xf32>
    %105 = arith.truncf %104 : vector<32x128xf32> to vector<32x128xbf16>
    %106 = tpu.concatenate %101, %105, %97 in 1 : vector<32x128xbf16>, vector<32x128xbf16>, vector<32x128xbf16> -> vector<32x384xbf16>
    %cst_58 = arith.constant dense<0.000000e+00> : vector<32x128xf32>
    %107 = tpu.matmul %106, %77, %cst_58 {dimension_numbers = #tpu.dot_dimension_numbers<[1], [0], [0], [1], [0, 0, 1, 1], [], []>} : vector<32x384xbf16>, vector<384x128xbf16>, vector<32x128xf32> -> vector<32x128xf32>
    %108 = vector.broadcast %79 : vector<1x128xf32> to vector<32x128xf32>
    %109 = arith.addf %107, %108 : vector<32x128xf32>
    %cst_59 = arith.constant 0.000000e+00 : f32
    %110 = vector.broadcast %cst_59 : f32 to vector<32x128xf32>
    %111 = arith.maximumf %109, %110 : vector<32x128xf32>
    %112 = arith.addf %111, %71 : vector<32x128xf32>
    %cst_60 = arith.constant 0.000000e+00 : f32
    %113 = vector.broadcast %cst_60 : f32 to vector<32x128xf32>
    %114 = arith.maximumf %112, %113 : vector<32x128xf32>
    %115 = arith.truncf %114 : vector<32x128xf32> to vector<32x128xbf16>
    %c0_61 = arith.constant 0 : index
    %c0_62 = arith.constant 0 : index
    %116 = vector.load %arg8[%c0_61, %c0_62] : memref<128x128xbf16, #tpu.memory_space<vmem>>, vector<128x128xbf16>
    %cst_63 = arith.constant dense<0.000000e+00> : vector<32x128xf32>
    %117 = tpu.matmul %115, %116, %cst_63 {dimension_numbers = #tpu.dot_dimension_numbers<[1], [0], [0], [1], [0, 0, 1, 1], [], []>} : vector<32x128xbf16>, vector<128x128xbf16>, vector<32x128xf32> -> vector<32x128xf32>
    %c0_64 = arith.constant 0 : index
    %c0_65 = arith.constant 0 : index
    %118 = vector.load %arg9[%c0_64, %c0_65] : memref<1x128xf32, #tpu.memory_space<vmem>>, vector<1x128xf32>
    %119 = vector.broadcast %118 : vector<1x128xf32> to vector<32x128xf32>
    %120 = arith.addf %117, %119 : vector<32x128xf32>
    %121 = vector.shape_cast %120 : vector<32x128xf32> to vector<2x16x128xf32>
    %122 = arith.truncf %121 : vector<2x16x128xf32> to vector<2x16x128xbf16>
    %c0_66 = arith.constant 0 : index
    %c0_67 = arith.constant 0 : index
    %c0_68 = arith.constant 0 : index
    %123 = vector.load %arg10[%c0_66, %c0_67, %c0_68] : memref<2x16x128xbf16, #tpu.memory_space<vmem>>, vector<2x16x128xbf16>
    tpu.vector_store %arg10[%c0_66, %c0_67, %c0_68], %122 {strides = array<i32>} : memref<2x16x128xbf16, #tpu.memory_space<vmem>>, vector<2x16x128xbf16>,
    return
  }
  func.func @transform_0(%arg0: i32) -> (i32, i32, i32) {
    %c0_i32 = arith.constant 0 : i32
    %c0_i32_0 = arith.constant 0 : i32
    %c0_i32_1 = arith.constant 0 : i32
    return %arg0, %c0_i32, %c0_i32_0 : i32, i32, i32
  }
  func.func @transform_1(%arg0: i32) -> (i32, i32, i32) {
    %c0_i32 = arith.constant 0 : i32
    %c0_i32_0 = arith.constant 0 : i32
    %c0_i32_1 = arith.constant 0 : i32
    %c0_i32_2 = arith.constant 0 : i32
    return %c0_i32, %c0_i32_0, %c0_i32_1 : i32, i32, i32
  }
  func.func @transform_2(%arg0: i32) -> (i32, i32, i32) {
    %c0_i32 = arith.constant 0 : i32
    %c0_i32_0 = arith.constant 0 : i32
    %c0_i32_1 = arith.constant 0 : i32
    %c0_i32_2 = arith.constant 0 : i32
    return %c0_i32, %c0_i32_0, %c0_i32_1 : i32, i32, i32
  }
  func.func @transform_3(%arg0: i32) -> (i32, i32, i32) {
    %c0_i32 = arith.constant 0 : i32
    %c0_i32_0 = arith.constant 0 : i32
    %c0_i32_1 = arith.constant 0 : i32
    %c0_i32_2 = arith.constant 0 : i32
    return %c0_i32, %c0_i32_0, %c0_i32_1 : i32, i32, i32
  }
  func.func @transform_4(%arg0: i32) -> (i32, i32, i32) {
    %c0_i32 = arith.constant 0 : i32
    %c0_i32_0 = arith.constant 0 : i32
    %c0_i32_1 = arith.constant 0 : i32
    %c0_i32_2 = arith.constant 0 : i32
    return %c0_i32, %c0_i32_0, %c0_i32_1 : i32, i32, i32
  }
  func.func @transform_5(%arg0: i32) -> (i32, i32, i32) {
    %c0_i32 = arith.constant 0 : i32
    %c0_i32_0 = arith.constant 0 : i32
    %c0_i32_1 = arith.constant 0 : i32
    %c0_i32_2 = arith.constant 0 : i32
    return %c0_i32, %c0_i32_0, %c0_i32_1 : i32, i32, i32
  }
  func.func @transform_6(%arg0: i32) -> (i32, i32, i32) {
    %c0_i32 = arith.constant 0 : i32
    %c0_i32_0 = arith.constant 0 : i32
    %c0_i32_1 = arith.constant 0 : i32
    %c0_i32_2 = arith.constant 0 : i32
    return %c0_i32, %c0_i32_0, %c0_i32_1 : i32, i32, i32
  }
  func.func @transform_7(%arg0: i32) -> (i32, i32) {
    %c0_i32 = arith.constant 0 : i32
    %c0_i32_0 = arith.constant 0 : i32
    %c0_i32_1 = arith.constant 0 : i32
    return %c0_i32, %c0_i32_0 : i32, i32
  }
  func.func @transform_8(%arg0: i32) -> (i32, i32) {
    %c0_i32 = arith.constant 0 : i32
    %c0_i32_0 = arith.constant 0 : i32
    %c0_i32_1 = arith.constant 0 : i32
    return %c0_i32, %c0_i32_0 : i32, i32
  }
  func.func @transform_9(%arg0: i32) -> (i32, i32, i32) {
    %c0_i32 = arith.constant 0 : i32
    %c0_i32_0 = arith.constant 0 : i32
    %c0_i32_1 = arith.constant 0 : i32
    return %arg0, %c0_i32, %c0_i32_0 : i32, i32, i32
  }
}

</mosaic_0001>

<bundles_post_ra>
// kernel: tpu_custom_call.1
= control target key start
LH: loop header
LB: loop body
LE: loop exit
PB: predicated region body
PF: predicated region fallthrough
CT: control target
= control target key end

     0   :  { %14 = vsyncpa [#allocation3], 0  ;;  %s2935_s0 = inlined_call_operand.hbm [shape: bf16[2,16,128], index: 0, kind: input, shape index: {}]   ;;  %s2936_s1 = inlined_call_operand.hbm [shape: bf16[2,384,128], index: 1, kind: input, shape index: {}]   ;;  %s2937_s2 = inlined_call_operand.vmem [shape: f32[2,1,128], index: 2, kind: input, shape index: {}]   ;;  %s2938_s3 = inlined_call_operand.hbm [shape: bf16[2,384,128], index: 3, kind: input, shape index: {}]   ;;  %s2939_s4 = inlined_call_operand.vmem [shape: f32[2,1,128], index: 4, kind: input, shape index: {}]   ;;  %s2940_s5 = inlined_call_operand.hbm [shape: bf16[1,128,128], index: 5, kind: input, shape index: {}]   ;;  %s2941_s6 = inlined_call_operand.vmem [shape: f32[1,1,128], index: 6, kind: input, shape index: {}]   ;;  %s2942_s7 = inlined_call_operand.hbm [shape: bf16[128,128], index: 7, kind: input, shape index: {}]   ;;  %s2943_s8 = inlined_call_operand.vmem [shape: f32[1,128], index: 8, kind: input, shape index: {}]   ;;  %s2944_s9 = inlined_call_operand.hbm [shape: bf16[2,16,128], index: 9, kind: output, shape index: {}]  }
   0x1   :  { %15 = vsyncpa [#allocation6], 0 }
   0x2   :  { %16 = vsyncpa [#allocation9], 0 }
   0x3   :  { %17 = vsyncpa [#allocation4], 0  ;;  %s2559_s30 = smov [#allocation5]   ;;  %s2560_s11 = smov [#allocation8]  }
   0x4   :  { %s35_s10 = sshll.u32 %s2559_s30, 4  ;;  %s63_s12 = sshll.u32 %s2560_s11, 4  ;;  %s36_s10 = int_to_ptr.vmem [resolvable:$true] %s35_s10  ;;  %s2618_s12 = int_to_ptr.vmem [resolvable:$true] %s63_s12 }
   0x5   :  { %s2419_s15 = scalar_lea.hbm %s2936_s1, 6144 }
   0x6   :  { %p2420_p0 = scmp.ne.s32.totalorder %s2936_s1, %s2419_s15  ;;  %p2423_p1 = scmp.lt.u32.totalorder %s2419_s15, %s2936_s1 }
   0x8   :  { %p2425_p2 = pnand %p2423_p1, %p2420_p0 }
   0xa   :  { %2428 = shalt.err (!%p2425_p2)
}
   0xb   :  { %s2429_s20 = scalar_lea.vmem %s36_s10, 6144  ;;  %p2434_p4 = scmp.lt.s32.totalorder %s36_s10, %s36_s10 }
   0xc   :  { %p2430_p3 = scmp.ne.s32.totalorder %s36_s10, %s2429_s20  ;;  %p2435_p5 = scmp.lt.s32.totalorder %s2429_s20, %s2429_s20 }
   0xe   :  { %p2436_p6 = por %p2435_p5, %p2434_p4 }
  0x10   :  { %p2437_p7 = pnand %p2436_p6, %p2430_p3 }
  0x12   :  { %2440 = shalt.err (!%p2437_p7)
}
  0x13   :  { %s2561_s21 = smov 64   ;;  %s2562_s22 = smov 4  }
  0x14   :  { %41 = dma.hbm_to_vmem [thread:$0]  %s2936_s1, 6144, %s36_s10, [#allocation6], %s2561_s21, %s2561_s21, %s2562_s22  }
  0x15   :  { %s2441_s27 = scalar_lea.hbm %s2940_s5, 1024 }
  0x16   :  { %p2442_p8 = scmp.ne.s32.totalorder %s2940_s5, %s2441_s27  ;;  %p2445_p9 = scmp.lt.u32.totalorder %s2441_s27, %s2940_s5 }
  0x18   :  { %p2447_p10 = pnand %p2445_p9, %p2442_p8 }
  0x1a   :  { %2450 = shalt.err (!%p2447_p10)
}
  0x1b   :  { %s2451_s13 = scalar_lea.vmem %s2618_s12, 1024  ;;  %p2456_p12 = scmp.lt.s32.totalorder %s2618_s12, %s2618_s12 }
  0x1c   :  { %p2452_p11 = scmp.ne.s32.totalorder %s2618_s12, %s2451_s13  ;;  %p2457_p13 = scmp.lt.s32.totalorder %s2451_s13, %s2451_s13 }
  0x1e   :  { %p2458_p0 = por %p2457_p13, %p2456_p12 }
  0x20   :  { %p2459_p1 = pnand %p2458_p0, %p2452_p11 }
  0x22   :  { %2462 = shalt.err (!%p2459_p1)
}
  0x23   :  { %69 = dma.hbm_to_vmem [thread:$0]  %s2940_s5, 1024, %s2618_s12, [#allocation9], %s2561_s21, %s2561_s21, %s2562_s22  }
  0x24   :  { %s2563_s14 = smov [#allocation2]   ;;  %s2564_s16 = smov [#allocation7]  }
  0x25   :  { %s23_s15 = sshll.u32 %s2563_s14, 4  ;;  %s49_s17 = sshll.u32 %s2564_s16, 4  ;;  %s24_s15 = int_to_ptr.vmem [resolvable:$true] %s23_s15  ;;  %s2655_s17 = int_to_ptr.vmem [resolvable:$true] %s49_s17 }
  0x26   :  { %s2463_s20 = scalar_lea.hbm %s2935_s0, 256 }
  0x27   :  { %p2464_p2 = scmp.ne.s32.totalorder %s2935_s0, %s2463_s20  ;;  %p2467_p3 = scmp.lt.u32.totalorder %s2463_s20, %s2935_s0 }
  0x29   :  { %p2469_p4 = pnand %p2467_p3, %p2464_p2 }
  0x2b   :  { %2472 = shalt.err (!%p2469_p4)
}
  0x2c   :  { %s2473_s5 = scalar_lea.vmem %s24_s15, 256  ;;  %p2478_p6 = scmp.lt.s32.totalorder %s24_s15, %s24_s15 }
  0x2d   :  { %p2474_p5 = scmp.ne.s32.totalorder %s24_s15, %s2473_s5  ;;  %p2479_p7 = scmp.lt.s32.totalorder %s2473_s5, %s2473_s5 }
  0x2f   :  { %p2480_p8 = por %p2479_p7, %p2478_p6 }
  0x31   :  { %p2481_p9 = pnand %p2480_p8, %p2474_p5 }
  0x33   :  { %2484 = shalt.err (!%p2481_p9)
}
  0x34   :  { %29 = dma.hbm_to_vmem [thread:$0]  %s2935_s0, 256, %s24_s15, [#allocation3], %s2561_s21, %s2561_s21, %s2562_s22  }
  0x35   :  { %s2485_s30 = scalar_lea.hbm %s2938_s3, 6144 }
  0x36   :  { %p2486_p10 = scmp.ne.s32.totalorder %s2938_s3, %s2485_s30  ;;  %p2489_p11 = scmp.lt.u32.totalorder %s2485_s30, %s2938_s3 }
  0x38   :  { %p2491_p12 = pnand %p2489_p11, %p2486_p10 }
  0x3a   :  { %2494 = shalt.err (!%p2491_p12)
}
  0x3b   :  { %s2495_s14 = scalar_lea.vmem %s2655_s17, 6144  ;;  %p2500_p0 = scmp.lt.s32.totalorder %s2655_s17, %s2655_s17 }
  0x3c   :  { %p2496_p13 = scmp.ne.s32.totalorder %s2655_s17, %s2495_s14  ;;  %p2501_p1 = scmp.lt.s32.totalorder %s2495_s14, %s2495_s14 }
  0x3e   :  { %p2502_p2 = por %p2501_p1, %p2500_p0 }
  0x40   :  { %p2503_p3 = pnand %p2502_p2, %p2496_p13 }
  0x42   :  { %2506 = shalt.err (!%p2503_p3)
}
  0x43   :  { %55 = dma.hbm_to_vmem [thread:$0]  %s2938_s3, 6144, %s2655_s17, [#allocation6], %s2561_s21, %s2561_s21, %s2562_s22  }
  0x44   :  { %s2565_s16 = smov [#allocation10]   ;;  %s2507_s23 = scalar_lea.hbm %s2942_s7, 1024 }
  0x45   :  { %s77_s18 = sshll.u32 %s2565_s16, 4  ;;  %p2508_p4 = scmp.ne.s32.totalorder %s2942_s7, %s2507_s23  ;;  %s78_s18 = int_to_ptr.vmem [resolvable:$true] %s77_s18 }
  0x46   :  { %p2511_p5 = scmp.lt.u32.totalorder %s2507_s23, %s2942_s7 }
  0x48   :  { %p2513_p6 = pnand %p2511_p5, %p2508_p4 }
  0x4a   :  { %2516 = shalt.err (!%p2513_p6)
}
  0x4b   :  { %s2517_s12 = scalar_lea.vmem %s78_s18, 1024  ;;  %p2522_p8 = scmp.lt.s32.totalorder %s78_s18, %s78_s18 }
  0x4c   :  { %p2518_p7 = scmp.ne.s32.totalorder %s78_s18, %s2517_s12  ;;  %p2523_p9 = scmp.lt.s32.totalorder %s2517_s12, %s2517_s12 }
  0x4e   :  { %p2524_p10 = por %p2523_p9, %p2522_p8 }
  0x50   :  { %p2525_p11 = pnand %p2524_p10, %p2518_p7 }
  0x52   :  { %2528 = shalt.err (!%p2525_p11)
}
  0x53   :  { %83 = dma.hbm_to_vmem [thread:$0]  %s2942_s7, 1024, %s78_s18, [#allocation9], %s2561_s21, %s2561_s21, %s2562_s22  }
  0x54   :  { %2551 = dma.done.wait [#allocation3], 256  }
  0x55   :  { %2552 = vsyncadd [#allocation3], 4294967040 }
  0x56   :  { %2553 = dma.done.wait [#allocation6], 12288  }
  0x57   :  { %2554 = vsyncadd [#allocation6], 4294955008 }
  0x58   :  { %2555 = dma.done.wait [#allocation9], 2048  }
  0x59   :  { %2556 = vsyncadd [#allocation9], 4294965248  ;;  %v2303_v0 = vld [vmem:[#allocation8] sm:$0xff]   ;;  %v2304_v1 = vld [vmem:[#allocation8 + $0x8] sm:$0xff]   ;;  %v110_v7 = vlaneseq  ;;  %vm2566_vm2 = vmmov 1   ;;  %s2567_s14 = smov [#allocation11]  }
  0x5a   :  { %2174 = vmatprep.subr.bf16.mxu0 %v2303_v0  ;;  %v2305_v2 = vld [vmem:[#allocation8 + $0x10] sm:$0xff]   ;;  %v2308_v3 = vld [vmem:[#allocation5 + $0x40] sm:$0xff]   ;;  %v2306_v5 = vld [vmem:[#allocation8 + $0x18] sm:$0xff]   ;;  %s1799_s0 = sshll.u32 %s2567_s14, 4  ;;  %s1800_s0 = int_to_ptr.vmem [resolvable:$true] %s1799_s0 }
  0x5b   :  { %2175 = vmatpush3.bf16.msra.mxu0 %v2303_v0  ;;  %v2309_v4 = vld [vmem:[#allocation5] sm:$0xff]   ;;  %2012 = vmatprep.subr.bf16.mxu1 %v2308_v3  ;;  %v2311_v6 = vld [vmem:[#allocation5 + $0x48] sm:$0xff]   ;;  %v2314_v10 = vld [vmem:[#allocation5 + $0x50] sm:$0xff]   ;;  %v2707_v12 = vshrl.u32 %v110_v7, 7  ;;  %s2529_s15 = scalar_lea.vmem %s1800_s0, 256  ;;  %p2534_p13 = scmp.lt.s32.totalorder %s1800_s0, %s1800_s0 }
  0x5c   :  { %2176 = vmatprep.subr.bf16.mxu0 %v2304_v1  ;;  %2013 = vmatpush3.bf16.msra.mxu1 %v2309_v4  ;;  %v2312_v8 = vld [vmem:[#allocation5 + $0x8] sm:$0xff]   ;;  %v2307_v9 = vld [vmem:[#allocation8 + $0x20] sm:$0xff]   ;;  %v2315_v11 = vld [vmem:[#allocation5 + $0x10] sm:$0xff]   ;;  %p2530_p12 = scmp.ne.s32.totalorder %s1800_s0, %s2529_s15  ;;  %p2535_p0 = scmp.lt.s32.totalorder %s2529_s15, %s2529_s15 }
  0x5d   :  { %2014 = vmatprep.subr.bf16.mxu1 %v2311_v6  ;;  %v2317_v13 = vld [vmem:[#allocation5 + $0x58] sm:$0xff]   ;;  %v2310_v14 = vld [vmem:[#allocation8 + $0x28] sm:$0xff]   ;;  %v2709_v16 = vld [vmem:[#allocation2] sm:$0xff]   ;;  %v2712_v17 = vand.u32 15, %v2707_v12  ;;  %vm416_vm0 = vcmp.lt.s32.totalorder %v2707_v12, 1  ;;  %v113_v31 = vadd.s32 16, %v2707_v12 }
  0x5e   :  { %v2318_v15 = vld [vmem:[#allocation5 + $0x18] sm:$0xff]   ;;  %v106_v18 = vunpack.c.l.bf16 %v2709_v16  ;;  %v107_v19 = vunpack.c.h.bf16 %v2709_v16  ;;  %v2322_v22 = vld [vmem:[#allocation5 + $0x60] sm:$0xff]   ;;  %2190 = vmatprep.mubr.bf16.mxu0 %v2709_v16  ;;  %v2313_v25 = vld [vmem:[#allocation8 + $0x30] sm:$0xff]   ;;  %vm397_vm4 = vcmp.lt.s32.totalorder %v2707_v12, 2  ;;  %vm1081_vm11 = vcmp.lt.s32.totalorder %v2707_v12, 4  ;;  %p2536_p1 = por %p2535_p0, %p2534_p13 }
  0x5f   :  { %2177 = vmatpush3.bf16.msra.mxu0 %v2304_v1  ;;  %v2716_v20 = vld [vmem:[#allocation2 + $0x8] sm:$0xff]   ;;  %v2323_v26 = vld [vmem:[#allocation5 + $0x20] sm:$0xff]   ;;  %vm421_vm1 = vcmp.ge.s32.totalorder %v2712_v17, 1  ;;  %v2325_v30 = vld [vmem:[#allocation5 + $0x68] sm:$0xff]   ;;  %v2736_v39 = vand.u32 15, %v113_v31  ;;  %vm402_vm5 = vcmp.ge.s32.totalorder %v2712_v17, 2 }
  0x60   :  { %2178 = vmatprep.subr.bf16.mxu0 %v2305_v2  ;;  %2015 = vmatpush3.bf16.msra.mxu1 %v2312_v8  ;;  %v109_v21 = vunpack.c.h.bf16 %v2716_v20  ;;  %v412_v23 = vrot.slane %v106_v18, 7  ;;  %v413_v24 = vrot.slane %v107_v19, 7  ;;  %v2316_v29 = vld [vmem:[#allocation8 + $0x38] sm:$0xff]   ;;  %vm2728_vm3 = vmpackc.low %vm2566_vm2, %vm421_vm1  ;;  %v2326_v34 = vld [vmem:[#allocation5 + $0x28] sm:$0xff]   ;;  %v108_v36 = vunpack.c.l.bf16 %v2716_v20  ;;  %p2537_p2 = pnand %p2536_p1, %p2530_p12 }
  0x61   :  { %2016 = vmatprep.subr.bf16.mxu1 %v2314_v10  ;;  %v2328_v37 = vld [vmem:[#allocation5 + $0x70] sm:$0xff]   ;;  %v2321_v38 = vld [vmem:[#allocation5 + $0x80] sm:$0xff]   ;;  %v393_v40 = vrot.slane %v106_v18, 6  ;;  %v394_v41 = vrot.slane %v107_v19, 6  ;;  %v2331_v45 = vld [vmem:[#allocation5 + $0x78] sm:$0xff]   ;;  %vm423_vm6 = vcmp.ge.s32.totalorder %v2736_v39, 1 }
  0x62   :  { %v415_v27 = vrot.slane %v109_v21, 7  ;;  %v419_v28 = vsel %vm416_vm0, %v412_v23, %v413_v24  ;;  %v396_v42 = vrot.slane %v109_v21, 6  ;;  %v2329_v43 = vld [vmem:[#allocation5 + $0x30] sm:$0xff]   ;;  %v414_v44 = vrot.slane %v108_v36, 7  ;;  %v2324_v46 = vld [vmem:[#allocation5 + $0x88] sm:$0xff]   ;;  %v2332_v47 = vld [vmem:[#allocation5 + $0x38] sm:$0xff]  }
  0x63   :  { %2179 = vmatpush3.bf16.msra.mxu0 %v2305_v2  ;;  %v400_v48 = vsel %vm397_vm4, %v393_v40, %v394_v41  ;;  %vm2745_vm7 = vmpackc.low %vm2566_vm2, %vm402_vm5  ;;  %vm404_vm8 = vcmp.ge.s32.totalorder %v2736_v39, 2  ;;  %v395_v53 = vrot.slane %v108_v36, 6  ;;  %v2327_v54 = vld [vmem:[#allocation5 + $0x90] sm:$0xff]   ;;  %v2330_v59 = vld [vmem:[#allocation5 + $0x98] sm:$0xff]   ;;  %vm1086_vm12 = vcmp.ge.s32.totalorder %v2712_v17, 4 }
  0x64   :  { %2180 = vmatprep.subr.bf16.mxu0 %v2306_v5  ;;  %2017 = vmatpush3.bf16.msra.mxu1 %v2315_v11  ;;  %v420_v32 = vsel %vm416_vm0, %v415_v27, %v412_v23  ;;  %v401_v49 = vsel %vm397_vm4, %v396_v42, %v393_v40  ;;  %v417_v51 = vsel %vm416_vm0, %v414_v44, %v415_v27  ;;  %vm2756_vm9 = vmpackc.low %vm2566_vm2, %vm423_vm6  ;;  %v2333_v62 = vld [vmem:[#allocation5 + $0xa0] sm:$0xff]   ;;  %v2334_v0 = vld [vmem:[#allocation5 + $0xa8] sm:$0xff]   ;;  %vm1088_vm14 = vcmp.ge.s32.totalorder %v2736_v39, 4 }
  0x65   :  { %2018 = vmatprep.subr.bf16.mxu1 %v2317_v13  ;;  %v1850_v35 = vpack.c.bf16 %v419_v28, %v420_v32  ;;  %v418_v52 = vsel %vm416_vm0, %v413_v24, %v414_v44  ;;  %v1853_v56 = vpack.c.bf16 %v400_v48, %v401_v49  ;;  %vm2762_vm10 = vmpackc.low %vm2566_vm2, %vm404_vm8  ;;  %v398_v60 = vsel %vm397_vm4, %v395_v53, %v396_v42  ;;  %v2335_v1 = vld [vmem:[#allocation5 + $0xb0] sm:$0xff]   ;;  %v2336_v2 = vld [vmem:[#allocation5 + $0xb8] sm:$0xff]  }
  0x66   :  { %v1856_v57 = vpack.c.bf16 %v417_v51, %v418_v52  ;;  %v399_v61 = vsel %vm397_vm4, %v394_v41, %v395_v53  ;;  %v2337_v3 = vld [vmem:[#allocation7 + $0x80] sm:$0xff]   ;;  %v2340_v6 = vld [vmem:[#allocation7 + $0x88] sm:$0xff]   ;;  %v2344_v10 = vld [vmem:[#allocation7 + $0x50] sm:$0xff]  }
  0x67   :  { %2181 = vmatpush3.bf16.msra.mxu0 %v2306_v5  ;;  %1851 = vmatprep.mubr.msk.bf16.mxu1 %vm2728_vm3, %v1850_v35  ;;  %v1859_v63 = vpack.c.bf16 %v398_v60, %v399_v61  ;;  %v2338_v4 = vld [vmem:[#allocation7 + $0x40] sm:$0xff]   ;;  %v2341_v7 = vld [vmem:[#allocation7 + $0x48] sm:$0xff]   ;;  %v2345_v11 = vld [vmem:[#allocation7 + $0x10] sm:$0xff]  }
  0x68   :  { %2182 = vmatprep.subr.bf16.mxu0 %v2307_v9  ;;  %2019 = vmatpush3.bf16.msra.mxu1 %v2318_v15  ;;  %v2339_v5 = vld [vmem:[#allocation7] sm:$0xff]   ;;  %v2342_v8 = vld [vmem:[#allocation7 + $0x8] sm:$0xff]   ;;  %v2346_v13 = vld [vmem:[#allocation7 + $0x98] sm:$0xff]  }
  0x69   :  { %2020 = vmatprep.subr.bf16.mxu1 %v2322_v22  ;;  %v2348_v15 = vld [vmem:[#allocation7 + $0x18] sm:$0xff]   ;;  %v2350_v18 = vld [vmem:[#allocation7 + $0x60] sm:$0xff]   ;;  %v2353_v21 = vld [vmem:[#allocation7 + $0x68] sm:$0xff]  }
  0x6a   :  { %v2351_v19 = vld [vmem:[#allocation7 + $0x20] sm:$0xff]   ;;  %v2354_v22 = vld [vmem:[#allocation7 + $0x28] sm:$0xff]   ;;  %v2355_v23 = vld [vmem:[#allocation7 + $0xb0] sm:$0xff]  }
  0x6b   :  { %2183 = vmatpush3.bf16.msra.mxu0 %v2307_v9  ;;  %v2343_v9 = vld [vmem:[#allocation7 + $0x90] sm:$0xff]   ;;  %v2359_v27 = vld [vmem:[#allocation7 + $0x78] sm:$0xff]   ;;  %v2367_v33 = vld [vmem:[#allocation5 + $0xc8] sm:$0xff]  }
  0x6c   :  { %2184 = vmatprep.subr.bf16.mxu0 %v2310_v14  ;;  %2021 = vmatpush3.bf16.msra.mxu1 %v2323_v26  ;;  %v2356_v24 = vld [vmem:[#allocation7 + $0x70] sm:$0xff]   ;;  %v2358_v26 = vld [vmem:[#allocation7 + $0xb8] sm:$0xff]   ;;  %vm2857_vm13 = vmpackc.low %vm2566_vm2, %vm1086_vm12 }
  0x6d   :  { %2022 = vmatprep.subr.bf16.mxu1 %v2325_v30  ;;  %v2360_v28 = vld [vmem:[#allocation7 + $0x38] sm:$0xff]   ;;  %v1824_v48 = vld [vmem:[%s2937_s2] ss:$0 sm:$0xff]  ;;  %vm2877_vm15 = vmpackc.low %vm2566_vm2, %vm1088_vm14 }
  0x6e   :  { %v2369_v55 = vld [vmem:[#allocation5 + $0x158] sm:$0xff]   ;;  %v2392_v39 = vld [vmem:[#allocation7 + $0x110] sm:$0xff]   ;;  %v2413_v50 = vld [vmem:[#allocation10 + $0x20] sm:$0xff]  }
  0x6f   :  { %2185 = vmatpush3.bf16.msra.mxu0 %v2310_v14  ;;  %v2347_v14 = vld [vmem:[#allocation7 + $0x58] sm:$0xff]   ;;  %v2411_v12 = vld [vmem:[#allocation10 + $0x10] sm:$0xff]  }
  0x70   :  { %2186 = vmatprep.subr.bf16.mxu0 %v2313_v25  ;;  %2023 = vmatpush3.bf16.msra.mxu1 %v2326_v34  ;;  %v2415_v58 = vld [vmem:[#allocation10 + $0x30] sm:$0xff]  }
  0x71   :  { %2024 = vmatprep.subr.bf16.mxu1 %v2328_v37 }
  0x73   :  { %2187 = vmatpush3.bf16.msra.mxu0 %v2313_v25  ;;  %v2357_v25 = vld [vmem:[#allocation7 + $0x30] sm:$0xff]  }
  0x74   :  { %2188 = vmatprep.subr.bf16.mxu0 %v2316_v29  ;;  %2025 = vmatpush3.bf16.msra.mxu1 %v2329_v43 }
  0x75   :  { %2026 = vmatprep.subr.bf16.mxu1 %v2331_v45 }
  0x77   :  { %2189 = vmatpush3.bf16.msra.mxu0 %v2316_v29  ;;  %v2361_v29 = vld [vmem:[#allocation5 + $0x140] sm:$0xff]  }
  0x78   :  { %2194 = vmatprep.subr.bf16.mxu0 %v2321_v38  ;;  %2027 = vmatpush3.bf16.msra.mxu1 %v2332_v47 }
  0x79   :  { %2050 = vmatprep.subr.bf16.mxu1 %v2338_v4 }
  0x7a   :  { %2191 = vmatmul.mubr.bf16.vlgmr.msra.gmra.mrb[0].mxu0 %v2716_v20 }
  0x7b   :  { %2195 = vmatpush3.bf16.msra.mxu0 %v2321_v38  ;;  %2210 = vmatprep.mubr.bf16.mxu0 %v2709_v16  ;;  %v2349_v16 = vld [vmem:[#allocation7 + $0xa0] sm:$0xff]  }
  0x7c   :  { %2196 = vmatprep.subr.bf16.mxu0 %v2324_v46  ;;  %1854 = vmatmul.mubr.msk.bf16.vlgmr.msra.gmra.mrb[0].mxu1 %vm2745_vm7, %v1853_v56 }
  0x7d   :  { %1857 = vmatprep.mubr.msk.bf16.mxu1 %vm2756_vm9, %v1856_v57  ;;  %2051 = vmatpush3.bf16.msra.mxu1 %v2339_v5 }
  0x7e   :  { %2052 = vmatprep.subr.bf16.mxu1 %v2341_v7 }
  0x7f   :  { %2197 = vmatpush3.bf16.msra.mxu0 %v2324_v46 }
  0x80   :  { %2198 = vmatprep.subr.bf16.mxu0 %v2327_v54 }
  0x81   :  { %2053 = vmatpush3.bf16.msra.mxu1 %v2342_v8 }
  0x82   :  { %2054 = vmatprep.subr.bf16.mxu1 %v2344_v10 }
  0x83   :  { %2199 = vmatpush3.bf16.msra.mxu0 %v2327_v54 }
  0x84   :  { %2200 = vmatprep.subr.bf16.mxu0 %v2330_v59  ;;  %1860 = vmatmul.mubr.msk.bf16.gmra.mrb[4].mxu1 %vm2762_vm10, %v1859_v63 }
  0x85   :  { %2055 = vmatpush3.bf16.msra.mxu1 %v2345_v11 }
  0x86   :  { %2056 = vmatprep.subr.bf16.mxu1 %v2347_v14 }
  0x87   :  { %2201 = vmatpush3.bf16.msra.mxu0 %v2330_v59 }
  0x88   :  { %2202 = vmatprep.subr.bf16.mxu0 %v2333_v62 }
  0x89   :  { %2057 = vmatpush3.bf16.msra.mxu1 %v2348_v15 }
  0x8a   :  { %2058 = vmatprep.subr.bf16.mxu1 %v2350_v18 }
  0x8b   :  { %2203 = vmatpush3.bf16.msra.mxu0 %v2333_v62 }
  0x8c   :  { %2204 = vmatprep.subr.bf16.mxu0 %v2334_v0 }
  0x8d   :  { %2059 = vmatpush3.bf16.msra.mxu1 %v2351_v19 }
  0x8e   :  { %2060 = vmatprep.subr.bf16.mxu1 %v2353_v21 }
  0x8f   :  { %2205 = vmatpush3.bf16.msra.mxu0 %v2334_v0 }
  0x90   :  { %2206 = vmatprep.subr.bf16.mxu0 %v2335_v1 }
  0x91   :  { %2061 = vmatpush3.bf16.msra.mxu1 %v2354_v22 }
  0x92   :  { %2062 = vmatprep.subr.bf16.mxu1 %v2356_v24 }
  0x93   :  { %2207 = vmatpush3.bf16.msra.mxu0 %v2335_v1 }
  0x94   :  { %2208 = vmatprep.subr.bf16.mxu0 %v2336_v2 }
  0x95   :  { %2063 = vmatpush3.bf16.msra.mxu1 %v2357_v25 }
  0x96   :  { %2064 = vmatprep.subr.bf16.mxu1 %v2359_v27 }
  0x97   :  { %2209 = vmatpush3.bf16.msra.mxu0 %v2336_v2 }
  0x98   :  { %2214 = vmatprep.subr.bf16.mxu0 %v2337_v3 }
  0x99   :  { %2065 = vmatpush3.bf16.msra.mxu1 %v2360_v28  ;;  %v2362_v28 = vld [vmem:[#allocation5 + $0x100] sm:$0xff]  }
  0x9a   :  { %2211 = vmatmul.mubr.bf16.vlgmr.msra.gmra.mrb[4].mxu0 %v2716_v20  ;;  %v2352_v20 = vld [vmem:[#allocation7 + $0xa8] sm:$0xff]   ;;  %2088 = vmatprep.subr.bf16.mxu1 %v2362_v28 }
  0x9b   :  { %2215 = vmatpush3.bf16.msra.mxu0 %v2337_v3 }
  0x9c   :  { %2216 = vmatprep.subr.bf16.mxu0 %v2340_v6 }
  0x9f   :  { %2217 = vmatpush3.bf16.msra.mxu0 %v2340_v6 }
  0xa0   :  { %2218 = vmatprep.subr.bf16.mxu0 %v2343_v9 }
  0xa3   :  { %2219 = vmatpush3.bf16.msra.mxu0 %v2343_v9 }
  0xa4   :  { %2220 = vmatprep.subr.bf16.mxu0 %v2346_v13 }
  0xa7   :  { %2221 = vmatpush3.bf16.msra.mxu0 %v2346_v13 }
  0xa8   :  { %2222 = vmatprep.subr.bf16.mxu0 %v2349_v16 }
  0xab   :  { %2223 = vmatpush3.bf16.msra.mxu0 %v2349_v16 }
  0xac   :  { %2224 = vmatprep.subr.bf16.mxu0 %v2352_v20 }
  0xaf   :  { %2225 = vmatpush3.bf16.msra.mxu0 %v2352_v20 }
  0xb0   :  { %2226 = vmatprep.subr.bf16.mxu0 %v2355_v23 }
  0xb3   :  { %2227 = vmatpush3.bf16.msra.mxu0 %v2355_v23 }
  0xb4   :  { %2228 = vmatprep.subr.bf16.mxu0 %v2358_v26 }
  0xb7   :  { %2229 = vmatpush3.bf16.msra.mxu0 %v2358_v26 }
  0xb8   :  { %2234 = vmatprep.subr.bf16.mxu0 %v2361_v29 }
 0x14d   :  { %v2777_v30 = vpop.f32.mrb[0].mxu0 }
 0x14e   :  { %v2779_v31 = vpop.f32.mrb[1].mxu0 }
 0x14f   :  { %v2781_v32 = vpop.f32.mrb[2].mxu0  ;;  %v2028_v35 = vpop.f32.mrb[0].mxu1 }
 0x150   :  { %v2783_v34 = vpop.f32.mrb[3].mxu0  ;;  %v2029_v36 = vpop.f32.mrb[1].mxu1 }
 0x151   :  { %v2030_v37 = vadd.f32 %v2029_v36, %v2028_v35  ;;  %v2031_v38 = vpop.f32.mrb[2].mxu1  ;;  %v2363_v35 = vld [vmem:[#allocation5 + $0x148] sm:$0xff]   ;;  %v2364_v36 = vld [vmem:[#allocation5 + $0xc0] sm:$0xff]  }
 0x152   :  { %v2032_v40 = vpop.f32.mrb[3].mxu1 }
 0x153   :  { %v2033_v41 = vadd.f32 %v2032_v40, %v2031_v38  ;;  %v616_v52 = vadd.f32 %v2030_v37, %v1824_v48  ;;  %v2366_v37 = vld [vmem:[#allocation5 + $0x150] sm:$0xff]  }
 0x154   :  { %v2368_v38 = vld [vmem:[#allocation5 + $0x110] sm:$0xff]  }
 0x155   :  { %v619_v60 = vadd.f32 %v2033_v41, %v1824_v48  ;;  %v2370_v40 = vld [vmem:[#allocation5 + $0xd0] sm:$0xff]   ;;  %v2371_v41 = vld [vmem:[#allocation5 + $0x118] sm:$0xff]  }
 0x157   :  { %v2034_v42 = vpop.f32.mrb[4].mxu1 }
 0x158   :  { %v2035_v43 = vpop.f32.mrb[5].mxu1 }
 0x159   :  { %v2036_v44 = vadd.f32 %v2035_v43, %v2034_v42  ;;  %v2037_v45 = vpop.f32.mrb[6].mxu1  ;;  %v2372_v42 = vld [vmem:[#allocation5 + $0x160] sm:$0xff]   ;;  %v2373_v43 = vld [vmem:[#allocation5 + $0xd8] sm:$0xff]  }
 0x15a   :  { %v2038_v46 = vpop.f32.mrb[7].mxu1 }
 0x15b   :  { %v2039_v47 = vadd.f32 %v2038_v46, %v2037_v45  ;;  %v624_v49 = vadd.f32 %v2036_v44, %v1824_v48  ;;  %v2374_v44 = vld [vmem:[#allocation5 + $0x120] sm:$0xff]   ;;  %v2375_v45 = vld [vmem:[#allocation5 + $0x168] sm:$0xff]  }
 0x15c   :  { %v2376_v46 = vld [vmem:[#allocation5 + $0xe0] sm:$0xff]  }
 0x15d   :  { %v627_v56 = vadd.f32 %v2039_v47, %v1824_v48  ;;  %v2377_v47 = vld [vmem:[#allocation5 + $0x128] sm:$0xff]   ;;  %v2378_v48 = vld [vmem:[#allocation5 + $0x170] sm:$0xff]  }
 0x16d   :  { %v2212_v51 = vpop.f32.mrb[4].mxu0 }
 0x16e   :  { %v673_v53 = vadd.f32 %v2212_v51, %v624_v49  ;;  %v664_v54 = vpop.f32.mrb[5].mxu0  ;;  %v2379_v49 = vld [vmem:[#allocation5 + $0xe8] sm:$0xff]   ;;  %v2380_v51 = vld [vmem:[#allocation5 + $0x130] sm:$0xff]  }
 0x16f   :  { %v665_v57 = vadd.f32 %v664_v54, %v616_v52  ;;  %v2213_v59 = vpop.f32.mrb[6].mxu0  ;;  %v2381_v52 = vld [vmem:[#allocation5 + $0x178] sm:$0xff]  }
 0x170   :  { %v681_v61 = vmax.f32 %v673_v53, 0.0  ;;  %v676_v62 = vadd.f32 %v2213_v59, %v627_v56  ;;  %v667_v63 = vpop.f32.mrb[7].mxu0  ;;  %v2382_v53 = vld [vmem:[#allocation5 + $0xf0] sm:$0xff]   ;;  %v2383_v54 = vld [vmem:[#allocation5 + $0x138] sm:$0xff]   ;;  %v2386_v59 = vld [vmem:[#allocation7 + $0x100] sm:$0xff]  }
 0x171   :  { %v679_v0 = vmax.f32 %v665_v57, 0.0  ;;  %v668_v1 = vadd.f32 %v667_v63, %v619_v60  ;;  %v2384_v56 = vld [vmem:[#allocation5 + $0xf8] sm:$0xff]   ;;  %v2812_v57 = vld [vmem:[#allocation7 + $0x140] sm:$0xff]  }
 0x172   :  { %v682_v2 = vmax.f32 %v676_v62, 0.0  ;;  %v687_v3 = vrot.slane %v681_v61, 6  ;;  %v701_v7 = vrot.slane %v681_v61, 7 }
 0x173   :  { %v685_v4 = vrot.slane %v679_v0, 6  ;;  %v699_v5 = vrot.slane %v679_v0, 7  ;;  %v680_v6 = vmax.f32 %v668_v1, 0.0  ;;  %v1861_v1 = vld [vmem:[%s2939_s4] ss:$0 sm:$0xff] }
 0x174   :  { %v684_v8 = vpack.c.bf16 %v682_v2, %v681_v61  ;;  %v688_v9 = vrot.slane %v682_v2, 6  ;;  %v702_v10 = vrot.slane %v682_v2, 7 }
 0x175   :  { %v686_v11 = vrot.slane %v680_v6, 6  ;;  %v700_v13 = vrot.slane %v680_v6, 7  ;;  %v683_v14 = vpack.c.bf16 %v680_v6, %v679_v0 }
 0x176   :  { %v692_v15 = vsel %vm397_vm4, %v688_v9, %v685_v4  ;;  %v706_v16 = vsel %vm416_vm0, %v702_v10, %v699_v5  ;;  %v703_v18 = vsel %vm416_vm0, %v701_v7, %v702_v10  ;;  %v689_v19 = vsel %vm397_vm4, %v687_v3, %v688_v9 }
 0x177   :  { %v691_v20 = vsel %vm397_vm4, %v685_v4, %v686_v11  ;;  %2230 = vmatprep.mubr.bf16.mxu0 %v683_v14  ;;  %v705_v21 = vsel %vm416_vm0, %v699_v5, %v700_v13  ;;  %v704_v22 = vsel %vm416_vm0, %v700_v13, %v701_v7  ;;  %v690_v23 = vsel %vm397_vm4, %v686_v11, %v687_v3 }
 0x178   :  { %v1890_v24 = vpack.c.bf16 %v691_v20, %v692_v15  ;;  %2231 = vmatmul.mubr.bf16.vlgmr.msra.gmra.mrb[8].mxu0 %v684_v8  ;;  %v1887_v25 = vpack.c.bf16 %v705_v21, %v706_v16  ;;  %v1893_v26 = vpack.c.bf16 %v703_v18, %v704_v22  ;;  %v1896_v27 = vpack.c.bf16 %v689_v19, %v690_v23  ;;  %v1813_v8 = vld [vmem:[%s2941_s6] ss:$0 sm:$0xff] }
 0x179   :  { %2235 = vmatpush3.bf16.msra.mxu0 %v2361_v29  ;;  %v2365_v29 = vld [vmem:[#allocation5 + $0x108] sm:$0xff]   ;;  %v379_v11 = vadd.f32 %v1813_v8, %v2779_v31  ;;  %v382_v18 = vadd.f32 %v1813_v8, %v2783_v34 }
 0x17a   :  { %1888 = vmatprep.mubr.msk.bf16.mxu1 %vm2728_vm3, %v1887_v25  ;;  %2236 = vmatprep.subr.bf16.mxu0 %v2363_v35 }
 0x17b   :  { %1891 = vmatmul.mubr.msk.bf16.vlgmr.msra.gmra.mrb[8].mxu1 %vm2745_vm7, %v1890_v24 }
 0x17c   :  { %1894 = vmatprep.mubr.msk.bf16.mxu1 %vm2756_vm9, %v1893_v26  ;;  %2089 = vmatpush3.bf16.msra.mxu1 %v2364_v36  ;;  %v387_v36 = vadd.f32 %v2777_v30, %v1813_v8 }
 0x17d   :  { %2237 = vmatpush3.bf16.msra.mxu0 %v2363_v35  ;;  %2090 = vmatprep.subr.bf16.mxu1 %v2365_v29 }
 0x17e   :  { %2238 = vmatprep.subr.bf16.mxu0 %v2366_v37 }
 0x180   :  { %2091 = vmatpush3.bf16.msra.mxu1 %v2367_v33  ;;  %v390_v33 = vadd.f32 %v2781_v32, %v1813_v8  ;;  %v2394_v8 = vld [vmem:[#allocation7 + $0xd0] sm:$0xff]  }
 0x181   :  { %2239 = vmatpush3.bf16.msra.mxu0 %v2366_v37  ;;  %2092 = vmatprep.subr.bf16.mxu1 %v2368_v38 }
 0x182   :  { %2240 = vmatprep.subr.bf16.mxu0 %v2369_v55 }
 0x183   :  { %1897 = vmatmul.mubr.msk.bf16.gmra.mrb[12].mxu1 %vm2762_vm10, %v1896_v27 }
 0x184   :  { %2093 = vmatpush3.bf16.msra.mxu1 %v2370_v40 }
 0x185   :  { %2241 = vmatpush3.bf16.msra.mxu0 %v2369_v55  ;;  %2094 = vmatprep.subr.bf16.mxu1 %v2371_v41 }
 0x186   :  { %2242 = vmatprep.subr.bf16.mxu0 %v2372_v42 }
 0x188   :  { %2095 = vmatpush3.bf16.msra.mxu1 %v2373_v43 }
 0x189   :  { %2243 = vmatpush3.bf16.msra.mxu0 %v2372_v42  ;;  %2096 = vmatprep.subr.bf16.mxu1 %v2374_v44 }
 0x18a   :  { %2244 = vmatprep.subr.bf16.mxu0 %v2375_v45 }
 0x18c   :  { %2097 = vmatpush3.bf16.msra.mxu1 %v2376_v46 }
 0x18d   :  { %2245 = vmatpush3.bf16.msra.mxu0 %v2375_v45  ;;  %2098 = vmatprep.subr.bf16.mxu1 %v2377_v47 }
 0x18e   :  { %2246 = vmatprep.subr.bf16.mxu0 %v2378_v48 }
 0x190   :  { %2099 = vmatpush3.bf16.msra.mxu1 %v2379_v49  ;;  %v2387_v49 = vld [vmem:[#allocation7 + $0x148] sm:$0xff]  }
 0x191   :  { %2247 = vmatpush3.bf16.msra.mxu0 %v2378_v48  ;;  %2100 = vmatprep.subr.bf16.mxu1 %v2380_v51 }
 0x192   :  { %2248 = vmatprep.subr.bf16.mxu0 %v2381_v52 }
 0x194   :  { %2101 = vmatpush3.bf16.msra.mxu1 %v2382_v53 }
 0x195   :  { %2249 = vmatpush3.bf16.msra.mxu0 %v2381_v52  ;;  %2102 = vmatprep.subr.bf16.mxu1 %v2383_v54 }
 0x196   :  { %2254 = vmatprep.subr.bf16.mxu0 %v2812_v57 }
 0x198   :  { %2103 = vmatpush3.bf16.msra.mxu1 %v2384_v56 }
 0x199   :  { %2126 = vmatprep.subr.bf16.mxu1 %v2386_v59  ;;  %v2414_v59 = vld [vmem:[#allocation10 + $0x28] sm:$0xff]  }
 0x24b   :  { %v2232_v60 = vpop.f32.mrb[8].mxu0 }
 0x24c   :  { %v946_v61 = vpop.f32.mrb[9].mxu0 }
 0x24d   :  { %v2233_v62 = vpop.f32.mrb[10].mxu0 }
 0x24e   :  { %v2066_v63 = vpop.f32.mrb[8].mxu1  ;;  %v949_v0 = vpop.f32.mrb[11].mxu0 }
 0x24f   :  { %v2067_v2 = vpop.f32.mrb[9].mxu1 }
 0x250   :  { %v2068_v3 = vadd.f32 %v2067_v2, %v2066_v63  ;;  %v2069_v4 = vpop.f32.mrb[10].mxu1  ;;  %v2416_v2 = vld [vmem:[#allocation10 + $0x38] sm:$0xff]  }
 0x251   :  { %v2070_v5 = vpop.f32.mrb[11].mxu1 }
 0x252   :  { %v898_v6 = vadd.f32 %v2068_v3, %v1861_v1  ;;  %v2071_v7 = vadd.f32 %v2070_v5, %v2069_v4  ;;  %v2389_v4 = vld [vmem:[#allocation7 + $0x108] sm:$0xff]   ;;  %v2390_v5 = vld [vmem:[#allocation7 + $0x150] sm:$0xff]  }
 0x254   :  { %v947_v9 = vadd.f32 %v946_v61, %v898_v6  ;;  %v901_v10 = vadd.f32 %v2071_v7, %v1861_v1  ;;  %v2388_v61 = vld [vmem:[#allocation7 + $0xc0] sm:$0xff]   ;;  %v2391_v6 = vld [vmem:[#allocation7 + $0xc8] sm:$0xff]   ;;  %v2393_v7 = vld [vmem:[#allocation7 + $0x158] sm:$0xff]  }
 0x256   :  { %v961_v13 = vmax.f32 %v947_v9, 0.0  ;;  %v950_v14 = vadd.f32 %v949_v0, %v901_v10  ;;  %v2072_v15 = vpop.f32.mrb[12].mxu1  ;;  %v2395_v9 = vld [vmem:[#allocation7 + $0x118] sm:$0xff]   ;;  %v2396_v10 = vld [vmem:[#allocation7 + $0x160] sm:$0xff]  }
 0x257   :  { %v2073_v16 = vpop.f32.mrb[13].mxu1 }
 0x258   :  { %v965_v19 = vadd.f32 %v961_v13, %v379_v11  ;;  %v962_v20 = vmax.f32 %v950_v14, 0.0  ;;  %v2074_v21 = vadd.f32 %v2073_v16, %v2072_v15  ;;  %v2075_v22 = vpop.f32.mrb[14].mxu1  ;;  %v2397_v11 = vld [vmem:[#allocation7 + $0xd8] sm:$0xff]   ;;  %v2398_v13 = vld [vmem:[#allocation7 + $0x120] sm:$0xff]   ;;  %v2399_v14 = vld [vmem:[#allocation7 + $0x168] sm:$0xff]  }
 0x259   :  { %v2076_v23 = vpop.f32.mrb[15].mxu1  ;;  %v2400_v15 = vld [vmem:[#allocation7 + $0xe0] sm:$0xff]   ;;  %v2401_v16 = vld [vmem:[#allocation7 + $0x128] sm:$0xff]  }
 0x25a   :  { %v966_v24 = vadd.f32 %v962_v20, %v382_v18  ;;  %v906_v25 = vadd.f32 %v2074_v21, %v1861_v1  ;;  %v2077_v26 = vadd.f32 %v2076_v23, %v2075_v22  ;;  %v2823_v27 = vmax.f32 %v965_v19, 0.0  ;;  %v2402_v18 = vld [vmem:[#allocation7 + $0x170] sm:$0xff]   ;;  %v2403_v19 = vld [vmem:[#allocation7 + $0xe8] sm:$0xff]   ;;  %v2405_v21 = vld [vmem:[#allocation7 + $0x178] sm:$0xff]  }
 0x25b   :  { %v2404_v20 = vld [vmem:[#allocation7 + $0x130] sm:$0xff]   ;;  %v2407_v23 = vld [vmem:[#allocation7 + $0x138] sm:$0xff]  }
 0x25c   :  { %v2825_v28 = vmax.f32 %v966_v24, 0.0  ;;  %v955_v35 = vadd.f32 %v2232_v60, %v906_v25  ;;  %v909_v31 = vadd.f32 %v2077_v26, %v1861_v1  ;;  %v1077_v44 = vrot.slane %v2823_v27, 4  ;;  %v2406_v22 = vld [vmem:[#allocation7 + $0xf0] sm:$0xff]   ;;  %v2408_v24 = vld [vmem:[#allocation7 + $0xf8] sm:$0xff]   ;;  %v2409_v25 = vld [vmem:[#allocation10] sm:$0xff]  }
 0x25d   :  { %v1096_v45 = vrot.slane %v2823_v27, 6 }
 0x25e   :  { %v963_v29 = vmax.f32 %v955_v35, 0.0  ;;  %v958_v37 = vadd.f32 %v2233_v62, %v909_v31  ;;  %v1075_v34 = vpack.c.bf16 %v2825_v28, %v2823_v27  ;;  %v1078_v42 = vrot.slane %v2825_v28, 4 }
 0x25f   :  { %v1097_v30 = vrot.slane %v2825_v28, 6 }
 0x260   :  { %v967_v38 = vadd.f32 %v963_v29, %v387_v36  ;;  %v964_v55 = vmax.f32 %v958_v37, 0.0  ;;  %2250 = vmatprep.mubr.bf16.mxu0 %v1075_v34  ;;  %v1084_v51 = vsel %vm1081_vm11, %v1077_v44, %v1078_v42  ;;  %v1900_v37 = vld [vmem:[%s2937_s2 + $0x1] ss:$0 sm:$0xff] }
 0x261   :  { %v1102_v52 = vsel %vm397_vm4, %v1096_v45, %v1097_v30 }
 0x262   :  { %v2831_v40 = vmax.f32 %v967_v38, 0.0  ;;  %v968_v41 = vadd.f32 %v964_v55, %v390_v33 }
 0x264   :  { %v2835_v43 = vmax.f32 %v968_v41, 0.0  ;;  %v1098_v48 = vrot.slane %v2831_v40, 6  ;;  %v1079_v0 = vrot.slane %v2831_v40, 4 }
 0x266   :  { %v1080_v32 = vrot.slane %v2835_v43, 4  ;;  %v1076_v46 = vpack.c.bf16 %v2835_v43, %v2831_v40  ;;  %v1099_v47 = vrot.slane %v2835_v43, 6  ;;  %v1101_v62 = vsel %vm397_vm4, %v1097_v30, %v1098_v48 }
 0x267   :  { %v1083_v1 = vsel %vm1081_vm11, %v1078_v42, %v1079_v0 }
 0x268   :  { %2251 = vmatmul.mubr.bf16.vlgmr.msra.gmra.mrb[12].mxu0 %v1076_v46  ;;  %v1103_v17 = vsel %vm397_vm4, %v1099_v47, %v1096_v45  ;;  %v1085_v53 = vsel %vm1081_vm11, %v1080_v32, %v1077_v44  ;;  %v1100_v54 = vsel %vm397_vm4, %v1098_v48, %v1099_v47 }
 0x269   :  { %v1926_v56 = vpack.c.bf16 %v1102_v52, %v1103_v17  ;;  %v1929_v60 = vpack.c.bf16 %v1084_v51, %v1085_v53  ;;  %2255 = vmatpush3.bf16.msra.mxu0 %v2812_v57  ;;  %v1932_v63 = vpack.c.bf16 %v1100_v54, %v1101_v62  ;;  %v1082_v57 = vsel %vm1081_vm11, %v1079_v0, %v1080_v32 }
 0x26a   :  { %2256 = vmatprep.subr.bf16.mxu0 %v2387_v49  ;;  %v1935_v3 = vpack.c.bf16 %v1082_v57, %v1083_v1 }
 0x26b   :  { %1927 = vmatprep.mubr.msk.bf16.mxu1 %vm2745_vm7, %v1926_v56 }
 0x26c   :  { %1930 = vmatmul.mubr.msk.bf16.vlgmr.msra.gmra.mrb[16].mxu1 %vm2857_vm13, %v1929_v60 }
 0x26d   :  { %1933 = vmatprep.mubr.msk.bf16.mxu1 %vm2762_vm10, %v1932_v63  ;;  %2127 = vmatpush3.bf16.msra.mxu1 %v2388_v61 }
 0x26e   :  { %2257 = vmatpush3.bf16.msra.mxu0 %v2387_v49  ;;  %2128 = vmatprep.subr.bf16.mxu1 %v2389_v4 }
 0x26f   :  { %2258 = vmatprep.subr.bf16.mxu0 %v2390_v5 }
 0x271   :  { %2129 = vmatpush3.bf16.msra.mxu1 %v2391_v6 }
 0x272   :  { %2259 = vmatpush3.bf16.msra.mxu0 %v2390_v5  ;;  %2130 = vmatprep.subr.bf16.mxu1 %v2392_v39 }
 0x273   :  { %2260 = vmatprep.subr.bf16.mxu0 %v2393_v7 }
 0x274   :  { %1936 = vmatmul.mubr.msk.bf16.gmra.mrb[20].mxu1 %vm2877_vm15, %v1935_v3 }
 0x275   :  { %2131 = vmatpush3.bf16.msra.mxu1 %v2394_v8 }
 0x276   :  { %2261 = vmatpush3.bf16.msra.mxu0 %v2393_v7  ;;  %2132 = vmatprep.subr.bf16.mxu1 %v2395_v9 }
 0x277   :  { %2262 = vmatprep.subr.bf16.mxu0 %v2396_v10 }
 0x279   :  { %2133 = vmatpush3.bf16.msra.mxu1 %v2397_v11 }
 0x27a   :  { %2263 = vmatpush3.bf16.msra.mxu0 %v2396_v10  ;;  %2134 = vmatprep.subr.bf16.mxu1 %v2398_v13 }
 0x27b   :  { %2264 = vmatprep.subr.bf16.mxu0 %v2399_v14 }
 0x27d   :  { %2135 = vmatpush3.bf16.msra.mxu1 %v2400_v15 }
 0x27e   :  { %2265 = vmatpush3.bf16.msra.mxu0 %v2399_v14  ;;  %2136 = vmatprep.subr.bf16.mxu1 %v2401_v16 }
 0x27f   :  { %2266 = vmatprep.subr.bf16.mxu0 %v2402_v18 }
 0x281   :  { %2137 = vmatpush3.bf16.msra.mxu1 %v2403_v19 }
 0x282   :  { %2267 = vmatpush3.bf16.msra.mxu0 %v2402_v18  ;;  %2138 = vmatprep.subr.bf16.mxu1 %v2404_v20 }
 0x283   :  { %2268 = vmatprep.subr.bf16.mxu0 %v2405_v21 }
 0x285   :  { %2139 = vmatpush3.bf16.msra.mxu1 %v2406_v22  ;;  %v2410_v22 = vld [vmem:[#allocation10 + $0x8] sm:$0xff]  }
 0x286   :  { %2269 = vmatpush3.bf16.msra.mxu0 %v2405_v21  ;;  %2140 = vmatprep.subr.bf16.mxu1 %v2407_v23  ;;  %v2412_v23 = vld [vmem:[#allocation10 + $0x18] sm:$0xff]  }
 0x289   :  { %2141 = vmatpush3.bf16.msra.mxu1 %v2408_v24 }
 0x28a   :  { %2274 = vmatprep.subr.bf16.mxu1 %v2409_v25 }
 0x33b   :  { %v2252_v26 = vpop.f32.mrb[12].mxu0 }
 0x33c   :  { %v1343_v35 = vpop.f32.mrb[13].mxu0 }
 0x33d   :  { %v2253_v31 = vpop.f32.mrb[14].mxu0 }
 0x33e   :  { %v1346_v36 = vpop.f32.mrb[15].mxu0 }
 0x33f   :  { %v2104_v29 = vpop.f32.mrb[16].mxu1 }
 0x340   :  { %v2105_v34 = vpop.f32.mrb[17].mxu1 }
 0x341   :  { %v2106_v33 = vadd.f32 %v2105_v34, %v2104_v29  ;;  %v2107_v38 = vpop.f32.mrb[18].mxu1 }
 0x342   :  { %v2108_v55 = vpop.f32.mrb[19].mxu1 }
 0x343   :  { %v1295_v41 = vadd.f32 %v2106_v33, %v1900_v37  ;;  %v2109_v42 = vadd.f32 %v2108_v55, %v2107_v38 }
 0x345   :  { %v1344_v30 = vadd.f32 %v1343_v35, %v1295_v41  ;;  %v1298_v44 = vadd.f32 %v2109_v42, %v1900_v37 }
 0x347   :  { %v1358_v45 = vmax.f32 %v1344_v30, 0.0  ;;  %v1347_v32 = vadd.f32 %v1346_v36, %v1298_v44  ;;  %v2110_v46 = vpop.f32.mrb[20].mxu1  ;;  %v1937_v36 = vld [vmem:[%s2939_s4 + $0x1] ss:$0 sm:$0xff] }
 0x348   :  { %v2111_v47 = vpop.f32.mrb[21].mxu1 }
 0x349   :  { %v1359_v48 = vmax.f32 %v1347_v32, 0.0  ;;  %v2112_v49 = vadd.f32 %v2111_v47, %v2110_v46  ;;  %v2113_v51 = vpop.f32.mrb[22].mxu1  ;;  %v1364_v52 = vrot.slane %v1358_v45, 4  ;;  %v1378_v17 = vrot.slane %v1358_v45, 6 }
 0x34a   :  { %v2114_v53 = vpop.f32.mrb[23].mxu1 }
 0x34b   :  { %v1365_v54 = vrot.slane %v1359_v48, 4  ;;  %v1379_v56 = vrot.slane %v1359_v48, 6  ;;  %v1303_v60 = vadd.f32 %v2112_v49, %v1900_v37  ;;  %v2115_v61 = vadd.f32 %v2114_v53, %v2113_v51 }
 0x34c   :  { %v1362_v62 = vpack.c.bf16 %v1359_v48, %v1358_v45 }
 0x34d   :  { %v1370_v63 = vsel %vm1081_vm11, %v1364_v52, %v1365_v54  ;;  %v1352_v0 = vadd.f32 %v2252_v26, %v1303_v60  ;;  %v1306_v57 = vadd.f32 %v2115_v61, %v1900_v37  ;;  %v1384_v1 = vsel %vm397_vm4, %v1378_v17, %v1379_v56 }
 0x34e   :  { %2270 = vmatprep.mubr.bf16.mxu0 %v1362_v62 }
 0x34f   :  { %v1360_v3 = vmax.f32 %v1352_v0, 0.0  ;;  %v1355_v4 = vadd.f32 %v2253_v31, %v1306_v57 }
 0x351   :  { %v1366_v5 = vrot.slane %v1360_v3, 4  ;;  %v1380_v6 = vrot.slane %v1360_v3, 6  ;;  %v1361_v39 = vmax.f32 %v1355_v4, 0.0 }
 0x353   :  { %v1367_v7 = vrot.slane %v1361_v39, 4  ;;  %v1381_v8 = vrot.slane %v1361_v39, 6  ;;  %v1363_v9 = vpack.c.bf16 %v1361_v39, %v1360_v3  ;;  %v1383_v10 = vsel %vm397_vm4, %v1379_v56, %v1380_v6 }
 0x354   :  { %v1369_v11 = vsel %vm1081_vm11, %v1365_v54, %v1366_v5 }
 0x355   :  { %v1371_v13 = vsel %vm1081_vm11, %v1367_v7, %v1364_v52  ;;  %2271 = vmatmul.mubr.bf16.vlgmr.msra.gmra.mrb[16].mxu0 %v1363_v9  ;;  %v1385_v14 = vsel %vm397_vm4, %v1381_v8, %v1378_v17  ;;  %v1382_v15 = vsel %vm397_vm4, %v1380_v6, %v1381_v8  ;;  %v1368_v16 = vsel %vm1081_vm11, %v1366_v5, %v1367_v7 }
 0x356   :  { %v1966_v18 = vpack.c.bf16 %v1370_v63, %v1371_v13  ;;  %v1963_v19 = vpack.c.bf16 %v1384_v1, %v1385_v14  ;;  %v1969_v20 = vpack.c.bf16 %v1382_v15, %v1383_v10  ;;  %v1972_v21 = vpack.c.bf16 %v1368_v16, %v1369_v11 }
 0x358   :  { %1964 = vmatprep.mubr.msk.bf16.mxu1 %vm2745_vm7, %v1963_v19 }
 0x359   :  { %1967 = vmatmul.mubr.msk.bf16.vlgmr.msra.gmra.mrb[24].mxu1 %vm2857_vm13, %v1966_v18 }
 0x35a   :  { %1970 = vmatprep.mubr.msk.bf16.mxu1 %vm2762_vm10, %v1969_v20  ;;  %2275 = vmatpush3.bf16.msra.mxu1 %v2409_v25 }
 0x35b   :  { %2276 = vmatprep.subr.bf16.mxu1 %v2410_v22 }
 0x35e   :  { %2277 = vmatpush3.bf16.msra.mxu1 %v2410_v22 }
 0x35f   :  { %2278 = vmatprep.subr.bf16.mxu1 %v2411_v12 }
 0x361   :  { %1973 = vmatmul.mubr.msk.bf16.gmra.mrb[28].mxu1 %vm2877_vm15, %v1972_v21 }
 0x362   :  { %2279 = vmatpush3.bf16.msra.mxu1 %v2411_v12 }
 0x363   :  { %2280 = vmatprep.subr.bf16.mxu1 %v2412_v23 }
 0x366   :  { %2281 = vmatpush3.bf16.msra.mxu1 %v2412_v23 }
 0x367   :  { %2282 = vmatprep.subr.bf16.mxu1 %v2413_v50 }
 0x36a   :  { %2283 = vmatpush3.bf16.msra.mxu1 %v2413_v50 }
 0x36b   :  { %2284 = vmatprep.subr.bf16.mxu1 %v2414_v59 }
 0x36e   :  { %2285 = vmatpush3.bf16.msra.mxu1 %v2414_v59 }
 0x36f   :  { %2286 = vmatprep.subr.bf16.mxu1 %v2415_v58 }
 0x372   :  { %2287 = vmatpush3.bf16.msra.mxu1 %v2415_v58 }
 0x373   :  { %2288 = vmatprep.subr.bf16.mxu1 %v2416_v2 }
 0x376   :  { %2289 = vmatpush3.bf16.msra.mxu1 %v2416_v2 }
 0x428   :  { %v2272_v24 = vpop.f32.mrb[16].mxu0 }
 0x429   :  { %v1625_v25 = vpop.f32.mrb[17].mxu0 }
 0x42a   :  { %v2273_v26 = vpop.f32.mrb[18].mxu0 }
 0x42b   :  { %v1628_v35 = vpop.f32.mrb[19].mxu0 }
 0x42c   :  { %v2142_v31 = vpop.f32.mrb[24].mxu1 }
 0x42d   :  { %v2143_v29 = vpop.f32.mrb[25].mxu1 }
 0x42e   :  { %v2144_v37 = vadd.f32 %v2143_v29, %v2142_v31  ;;  %v2145_v34 = vpop.f32.mrb[26].mxu1 }
 0x42f   :  { %v2146_v33 = vpop.f32.mrb[27].mxu1 }
 0x430   :  { %v1577_v38 = vadd.f32 %v2144_v37, %v1937_v36  ;;  %v2147_v55 = vadd.f32 %v2146_v33, %v2145_v34 }
 0x432   :  { %v1626_v41 = vadd.f32 %v1625_v25, %v1577_v38  ;;  %v1580_v42 = vadd.f32 %v2147_v55, %v1937_v36 }
 0x434   :  { %v1640_v30 = vmax.f32 %v1626_v41, 0.0  ;;  %v1629_v44 = vadd.f32 %v1628_v35, %v1580_v42  ;;  %v2148_v45 = vpop.f32.mrb[28].mxu1 }
 0x435   :  { %v2149_v32 = vpop.f32.mrb[29].mxu1 }
 0x436   :  { %v1641_v46 = vmax.f32 %v1629_v44, 0.0  ;;  %v2150_v47 = vadd.f32 %v2149_v32, %v2148_v45  ;;  %v2151_v48 = vpop.f32.mrb[30].mxu1  ;;  %v1644_v49 = vadd.f32 %v1640_v30, %v2823_v27 }
 0x437   :  { %v2152_v51 = vpop.f32.mrb[31].mxu1 }
 0x438   :  { %v1585_v52 = vadd.f32 %v2150_v47, %v1937_v36  ;;  %v2153_v17 = vadd.f32 %v2152_v51, %v2151_v48  ;;  %v1645_v53 = vadd.f32 %v1641_v46, %v2825_v28  ;;  %v1648_v60 = vmax.f32 %v1644_v49, 0.0  ;;  %v1974_v28 = vld [vmem:[%s2943_s8] ss:$0 sm:$0xff] }
 0x43a   :  { %v1634_v54 = vadd.f32 %v2272_v24, %v1585_v52  ;;  %v1588_v56 = vadd.f32 %v2153_v17, %v1937_v36  ;;  %v1649_v61 = vmax.f32 %v1645_v53, 0.0 }
 0x43c   :  { %v1642_v62 = vmax.f32 %v1634_v54, 0.0  ;;  %v1637_v63 = vadd.f32 %v2273_v26, %v1588_v56  ;;  %v1652_v0 = vpack.c.bf16 %v1649_v61, %v1648_v60 }
 0x43e   :  { %v1646_v57 = vadd.f32 %v1642_v62, %v2831_v40  ;;  %v1643_v1 = vmax.f32 %v1637_v63, 0.0  ;;  %2290 = vmatprep.mubr.bf16.mxu1 %v1652_v0 }
 0x440   :  { %v1647_v3 = vadd.f32 %v1643_v1, %v2835_v43  ;;  %v1650_v4 = vmax.f32 %v1646_v57, 0.0 }
 0x442   :  { %v1651_v27 = vmax.f32 %v1647_v3, 0.0 }
 0x444   :  { %v1653_v5 = vpack.c.bf16 %v1651_v27, %v1650_v4 }
 0x446   :  { %2291 = vmatmul.mubr.bf16.vlgmr.msra.gmra.mrb[32].mxu1 %v1653_v5 }
 0x519   :  { %v2292_v6 = vpop.f32.mrb[32].mxu1 }
 0x51a   :  { %v1759_v39 = vpop.f32.mrb[33].mxu1  ;;  %v1768_v8 = vadd.f32 %v2292_v6, %v1974_v28 }
 0x51b   :  { %v2293_v7 = vpop.f32.mrb[34].mxu1  ;;  %v1760_v40 = vadd.f32 %v1974_v28, %v1759_v39 }
 0x51c   :  { %v1771_v9 = vadd.f32 %v2293_v7, %v1974_v28  ;;  %v1762_v10 = vpop.f32.mrb[35].mxu1 }
 0x51d   :  { %v1763_v11 = vadd.f32 %v1974_v28, %v1762_v10 }
 0x51e   :  { %v1999_v13 = vpack.c.bf16 %v1771_v9, %v1768_v8 }
 0x51f   :  { %v1994_v43 = vpack.c.bf16 %v1763_v11, %v1760_v40 }
 0x520   :  { %2001 = vst [vmem:[#allocation11 + $0x8] sm:$0xff] %v1999_v13  }
 0x521   :  { %1995 = vst [vmem:[#allocation11] sm:$0xff] %v1994_v43  }
 0x522   :  { %2540 = shalt.err (!%p2537_p2)
}
 0x523   :  { %s2541_s18 = scalar_lea.hbm %s2944_s9, 256 }
 0x524   :  { %p2542_p3 = scmp.ne.s32.totalorder %s2944_s9, %s2541_s18  ;;  %p2545_p4 = scmp.lt.u32.totalorder %s2541_s18, %s2944_s9 }
 0x526   :  { %p2547_p5 = pnand %p2545_p4, %p2542_p3 }
 0x528   :  { %2550 = shalt.err (!%p2547_p5)
}
 0x529   :  { %1805 = dma.vmem_to_hbm [thread:$0]  %s1800_s0, 256, %s2944_s9, [#allocation4], %s2561_s21, %s2561_s21, %s2562_s22  }
 0x52a   :  { %2557 = dma.done.wait [#allocation4], 256  }
 0x52b   :  { %2558 = vsyncadd [#allocation4], 4294967040 }
 0x52c   :  { %1809 = vsyncpa [#allocation3], 1 }
 0x52d   :  { %1810 = vsyncpa [#allocation6], 1 }
 0x52e   :  { %1811 = vsyncpa [#allocation9], 1 }
 0x52f   :  { %1812 = vsyncpa [#allocation4], 1 }

// kernel: tpu_custom_call.1
= control target key start
LH: loop header
LB: loop body
LE: loop exit
PB: predicated region body
PF: predicated region fallthrough
CT: control target
= control target key end

     0   :  { %14 = vsyncpa [#allocation3], 0  ;;  %s2935_s0 = inlined_call_operand.hbm [shape: bf16[2,16,128], index: 0, kind: input, shape index: {}]   ;;  %s2936_s1 = inlined_call_operand.hbm [shape: bf16[2,384,128], index: 1, kind: input, shape index: {}]   ;;  %s2937_s2 = inlined_call_operand.vmem [shape: f32[2,1,128], index: 2, kind: input, shape index: {}]   ;;  %s2938_s3 = inlined_call_operand.hbm [shape: bf16[2,384,128], index: 3, kind: input, shape index: {}]   ;;  %s2939_s4 = inlined_call_operand.vmem [shape: f32[2,1,128], index: 4, kind: input, shape index: {}]   ;;  %s2940_s5 = inlined_call_operand.hbm [shape: bf16[1,128,128], index: 5, kind: input, shape index: {}]   ;;  %s2941_s6 = inlined_call_operand.vmem [shape: f32[1,1,128], index: 6, kind: input, shape index: {}]   ;;  %s2942_s7 = inlined_call_operand.hbm [shape: bf16[128,128], index: 7, kind: input, shape index: {}]   ;;  %s2943_s8 = inlined_call_operand.vmem [shape: f32[1,128], index: 8, kind: input, shape index: {}]   ;;  %s2944_s9 = inlined_call_operand.hbm [shape: bf16[2,16,128], index: 9, kind: output, shape index: {}]  }
   0x1   :  { %15 = vsyncpa [#allocation6], 0 }
   0x2   :  { %16 = vsyncpa [#allocation9], 0 }
   0x3   :  { %17 = vsyncpa [#allocation4], 0  ;;  %s2559_s30 = smov [#allocation5]   ;;  %s2560_s11 = smov [#allocation8]  }
   0x4   :  { %s35_s10 = sshll.u32 %s2559_s30, 4  ;;  %s63_s12 = sshll.u32 %s2560_s11, 4  ;;  %s36_s10 = int_to_ptr.vmem [resolvable:$true] %s35_s10  ;;  %s2618_s12 = int_to_ptr.vmem [resolvable:$true] %s63_s12 }
   0x5   :  { %s2419_s15 = scalar_lea.hbm %s2936_s1, 6144 }
   0x6   :  { %p2420_p0 = scmp.ne.s32.totalorder %s2936_s1, %s2419_s15  ;;  %p2423_p1 = scmp.lt.u32.totalorder %s2419_s15, %s2936_s1 }
   0x8   :  { %p2425_p2 = pnand %p2423_p1, %p2420_p0 }
   0xa   :  { %2428 = shalt.err (!%p2425_p2)
}
   0xb   :  { %s2429_s20 = scalar_lea.vmem %s36_s10, 6144  ;;  %p2434_p4 = scmp.lt.s32.totalorder %s36_s10, %s36_s10 }
   0xc   :  { %p2430_p3 = scmp.ne.s32.totalorder %s36_s10, %s2429_s20  ;;  %p2435_p5 = scmp.lt.s32.totalorder %s2429_s20, %s2429_s20 }
   0xe   :  { %p2436_p6 = por %p2435_p5, %p2434_p4 }
  0x10   :  { %p2437_p7 = pnand %p2436_p6, %p2430_p3 }
  0x12   :  { %2440 = shalt.err (!%p2437_p7)
}
  0x13   :  { %s2561_s21 = smov 64   ;;  %s2562_s22 = smov 4  }
  0x14   :  { %41 = dma.hbm_to_vmem [thread:$0]  %s2936_s1, 6144, %s36_s10, [#allocation6], %s2561_s21, %s2561_s21, %s2562_s22  }
  0x15   :  { %s2441_s27 = scalar_lea.hbm %s2940_s5, 1024 }
  0x16   :  { %p2442_p8 = scmp.ne.s32.totalorder %s2940_s5, %s2441_s27  ;;  %p2445_p9 = scmp.lt.u32.totalorder %s2441_s27, %s2940_s5 }
  0x18   :  { %p2447_p10 = pnand %p2445_p9, %p2442_p8 }
  0x1a   :  { %2450 = shalt.err (!%p2447_p10)
}
  0x1b   :  { %s2451_s13 = scalar_lea.vmem %s2618_s12, 1024  ;;  %p2456_p12 = scmp.lt.s32.totalorder %s2618_s12, %s2618_s12 }
  0x1c   :  { %p2452_p11 = scmp.ne.s32.totalorder %s2618_s12, %s2451_s13  ;;  %p2457_p13 = scmp.lt.s32.totalorder %s2451_s13, %s2451_s13 }
  0x1e   :  { %p2458_p0 = por %p2457_p13, %p2456_p12 }
  0x20   :  { %p2459_p1 = pnand %p2458_p0, %p2452_p11 }
  0x22   :  { %2462 = shalt.err (!%p2459_p1)
}
  0x23   :  { %69 = dma.hbm_to_vmem [thread:$0]  %s2940_s5, 1024, %s2618_s12, [#allocation9], %s2561_s21, %s2561_s21, %s2562_s22  }
  0x24   :  { %s2563_s14 = smov [#allocation2]   ;;  %s2564_s16 = smov [#allocation7]  }
  0x25   :  { %s23_s15 = sshll.u32 %s2563_s14, 4  ;;  %s49_s17 = sshll.u32 %s2564_s16, 4  ;;  %s24_s15 = int_to_ptr.vmem [resolvable:$true] %s23_s15  ;;  %s2655_s17 = int_to_ptr.vmem [resolvable:$true] %s49_s17 }
  0x26   :  { %s2463_s20 = scalar_lea.hbm %s2935_s0, 256 }
  0x27   :  { %p2464_p2 = scmp.ne.s32.totalorder %s2935_s0, %s2463_s20  ;;  %p2467_p3 = scmp.lt.u32.totalorder %s2463_s20, %s2935_s0 }
  0x29   :  { %p2469_p4 = pnand %p2467_p3, %p2464_p2 }
  0x2b   :  { %2472 = shalt.err (!%p2469_p4)
}
  0x2c   :  { %s2473_s5 = scalar_lea.vmem %s24_s15, 256  ;;  %p2478_p6 = scmp.lt.s32.totalorder %s24_s15, %s24_s15 }
  0x2d   :  { %p2474_p5 = scmp.ne.s32.totalorder %s24_s15, %s2473_s5  ;;  %p2479_p7 = scmp.lt.s32.totalorder %s2473_s5, %s2473_s5 }
  0x2f   :  { %p2480_p8 = por %p2479_p7, %p2478_p6 }
  0x31   :  { %p2481_p9 = pnand %p2480_p8, %p2474_p5 }
  0x33   :  { %2484 = shalt.err (!%p2481_p9)
}
  0x34   :  { %29 = dma.hbm_to_vmem [thread:$0]  %s2935_s0, 256, %s24_s15, [#allocation3], %s2561_s21, %s2561_s21, %s2562_s22  }
  0x35   :  { %s2485_s30 = scalar_lea.hbm %s2938_s3, 6144 }
  0x36   :  { %p2486_p10 = scmp.ne.s32.totalorder %s2938_s3, %s2485_s30  ;;  %p2489_p11 = scmp.lt.u32.totalorder %s2485_s30, %s2938_s3 }
  0x38   :  { %p2491_p12 = pnand %p2489_p11, %p2486_p10 }
  0x3a   :  { %2494 = shalt.err (!%p2491_p12)
}
  0x3b   :  { %s2495_s14 = scalar_lea.vmem %s2655_s17, 6144  ;;  %p2500_p0 = scmp.lt.s32.totalorder %s2655_s17, %s2655_s17 }
  0x3c   :  { %p2496_p13 = scmp.ne.s32.totalorder %s2655_s17, %s2495_s14  ;;  %p2501_p1 = scmp.lt.s32.totalorder %s2495_s14, %s2495_s14 }
  0x3e   :  { %p2502_p2 = por %p2501_p1, %p2500_p0 }
  0x40   :  { %p2503_p3 = pnand %p2502_p2, %p2496_p13 }
  0x42   :  { %2506 = shalt.err (!%p2503_p3)
}
  0x43   :  { %55 = dma.hbm_to_vmem [thread:$0]  %s2938_s3, 6144, %s2655_s17, [#allocation6], %s2561_s21, %s2561_s21, %s2562_s22  }
  0x44   :  { %s2565_s16 = smov [#allocation10]   ;;  %s2507_s23 = scalar_lea.hbm %s2942_s7, 1024 }
  0x45   :  { %s77_s18 = sshll.u32 %s2565_s16, 4  ;;  %p2508_p4 = scmp.ne.s32.totalorder %s2942_s7, %s2507_s23  ;;  %s78_s18 = int_to_ptr.vmem [resolvable:$true] %s77_s18 }
  0x46   :  { %p2511_p5 = scmp.lt.u32.totalorder %s2507_s23, %s2942_s7 }
  0x48   :  { %p2513_p6 = pnand %p2511_p5, %p2508_p4 }
  0x4a   :  { %2516 = shalt.err (!%p2513_p6)
}
  0x4b   :  { %s2517_s12 = scalar_lea.vmem %s78_s18, 1024  ;;  %p2522_p8 = scmp.lt.s32.totalorder %s78_s18, %s78_s18 }
  0x4c   :  { %p2518_p7 = scmp.ne.s32.totalorder %s78_s18, %s2517_s12  ;;  %p2523_p9 = scmp.lt.s32.totalorder %s2517_s12, %s2517_s12 }
  0x4e   :  { %p2524_p10 = por %p2523_p9, %p2522_p8 }
  0x50   :  { %p2525_p11 = pnand %p2524_p10, %p2518_p7 }
  0x52   :  { %2528 = shalt.err (!%p2525_p11)
}
  0x53   :  { %83 = dma.hbm_to_vmem [thread:$0]  %s2942_s7, 1024, %s78_s18, [#allocation9], %s2561_s21, %s2561_s21, %s2562_s22  }
  0x54   :  { %2551 = dma.done.wait [#allocation3], 256  }
  0x55   :  { %2552 = vsyncadd [#allocation3], 4294967040 }
  0x56   :  { %2553 = dma.done.wait [#allocation6], 12288  }
  0x57   :  { %2554 = vsyncadd [#allocation6], 4294955008 }
  0x58   :  { %2555 = dma.done.wait [#allocation9], 2048  }
  0x59   :  { %2556 = vsyncadd [#allocation9], 4294965248  ;;  %v2303_v0 = vld [vmem:[#allocation8] sm:$0xff]   ;;  %v2304_v1 = vld [vmem:[#allocation8 + $0x8] sm:$0xff]   ;;  %v110_v7 = vlaneseq  ;;  %vm2566_vm2 = vmmov 1   ;;  %s2567_s14 = smov [#allocation11]  }
  0x5a   :  { %2174 = vmatprep.subr.bf16.mxu0 %v2303_v0  ;;  %v2305_v2 = vld [vmem:[#allocation8 + $0x10] sm:$0xff]   ;;  %v2308_v3 = vld [vmem:[#allocation5 + $0x40] sm:$0xff]   ;;  %v2306_v5 = vld [vmem:[#allocation8 + $0x18] sm:$0xff]   ;;  %s1799_s0 = sshll.u32 %s2567_s14, 4  ;;  %s1800_s0 = int_to_ptr.vmem [resolvable:$true] %s1799_s0 }
  0x5b   :  { %2175 = vmatpush3.bf16.msra.mxu0 %v2303_v0  ;;  %v2309_v4 = vld [vmem:[#allocation5] sm:$0xff]   ;;  %2012 = vmatprep.subr.bf16.mxu1 %v2308_v3  ;;  %v2311_v6 = vld [vmem:[#allocation5 + $0x48] sm:$0xff]   ;;  %v2314_v10 = vld [vmem:[#allocation5 + $0x50] sm:$0xff]   ;;  %v2707_v12 = vshrl.u32 %v110_v7, 7  ;;  %s2529_s15 = scalar_lea.vmem %s1800_s0, 256  ;;  %p2534_p13 = scmp.lt.s32.totalorder %s1800_s0, %s1800_s0 }
  0x5c   :  { %2176 = vmatprep.subr.bf16.mxu0 %v2304_v1  ;;  %2013 = vmatpush3.bf16.msra.mxu1 %v2309_v4  ;;  %v2312_v8 = vld [vmem:[#allocation5 + $0x8] sm:$0xff]   ;;  %v2307_v9 = vld [vmem:[#allocation8 + $0x20] sm:$0xff]   ;;  %v2315_v11 = vld [vmem:[#allocation5 + $0x10] sm:$0xff]   ;;  %p2530_p12 = scmp.ne.s32.totalorder %s1800_s0, %s2529_s15  ;;  %p2535_p0 = scmp.lt.s32.totalorder %s2529_s15, %s2529_s15 }
  0x5d   :  { %2014 = vmatprep.subr.bf16.mxu1 %v2311_v6  ;;  %v2317_v13 = vld [vmem:[#allocation5 + $0x58] sm:$0xff]   ;;  %v2310_v14 = vld [vmem:[#allocation8 + $0x28] sm:$0xff]   ;;  %v2709_v16 = vld [vmem:[#allocation2] sm:$0xff]   ;;  %v2712_v17 = vand.u32 15, %v2707_v12  ;;  %vm416_vm0 = vcmp.lt.s32.totalorder %v2707_v12, 1  ;;  %v113_v31 = vadd.s32 16, %v2707_v12 }
  0x5e   :  { %v2318_v15 = vld [vmem:[#allocation5 + $0x18] sm:$0xff]   ;;  %v106_v18 = vunpack.c.l.bf16 %v2709_v16  ;;  %v107_v19 = vunpack.c.h.bf16 %v2709_v16  ;;  %v2322_v22 = vld [vmem:[#allocation5 + $0x60] sm:$0xff]   ;;  %2190 = vmatprep.mubr.bf16.mxu0 %v2709_v16  ;;  %v2313_v25 = vld [vmem:[#allocation8 + $0x30] sm:$0xff]   ;;  %vm397_vm4 = vcmp.lt.s32.totalorder %v2707_v12, 2  ;;  %vm1081_vm11 = vcmp.lt.s32.totalorder %v2707_v12, 4  ;;  %p2536_p1 = por %p2535_p0, %p2534_p13 }
  0x5f   :  { %2177 = vmatpush3.bf16.msra.mxu0 %v2304_v1  ;;  %v2716_v20 = vld [vmem:[#allocation2 + $0x8] sm:$0xff]   ;;  %v2323_v26 = vld [vmem:[#allocation5 + $0x20] sm:$0xff]   ;;  %vm421_vm1 = vcmp.ge.s32.totalorder %v2712_v17, 1  ;;  %v2325_v30 = vld [vmem:[#allocation5 + $0x68] sm:$0xff]   ;;  %v2736_v39 = vand.u32 15, %v113_v31  ;;  %vm402_vm5 = vcmp.ge.s32.totalorder %v2712_v17, 2 }
  0x60   :  { %2178 = vmatprep.subr.bf16.mxu0 %v2305_v2  ;;  %2015 = vmatpush3.bf16.msra.mxu1 %v2312_v8  ;;  %v109_v21 = vunpack.c.h.bf16 %v2716_v20  ;;  %v412_v23 = vrot.slane %v106_v18, 7  ;;  %v413_v24 = vrot.slane %v107_v19, 7  ;;  %v2316_v29 = vld [vmem:[#allocation8 + $0x38] sm:$0xff]   ;;  %vm2728_vm3 = vmpackc.low %vm2566_vm2, %vm421_vm1  ;;  %v2326_v34 = vld [vmem:[#allocation5 + $0x28] sm:$0xff]   ;;  %v108_v36 = vunpack.c.l.bf16 %v2716_v20  ;;  %p2537_p2 = pnand %p2536_p1, %p2530_p12 }
  0x61   :  { %2016 = vmatprep.subr.bf16.mxu1 %v2314_v10  ;;  %v2328_v37 = vld [vmem:[#allocation5 + $0x70] sm:$0xff]   ;;  %v2321_v38 = vld [vmem:[#allocation5 + $0x80] sm:$0xff]   ;;  %v393_v40 = vrot.slane %v106_v18, 6  ;;  %v394_v41 = vrot.slane %v107_v19, 6  ;;  %v2331_v45 = vld [vmem:[#allocation5 + $0x78] sm:$0xff]   ;;  %vm423_vm6 = vcmp.ge.s32.totalorder %v2736_v39, 1 }
  0x62   :  { %v415_v27 = vrot.slane %v109_v21, 7  ;;  %v419_v28 = vsel %vm416_vm0, %v412_v23, %v413_v24  ;;  %v396_v42 = vrot.slane %v109_v21, 6  ;;  %v2329_v43 = vld [vmem:[#allocation5 + $0x30] sm:$0xff]   ;;  %v414_v44 = vrot.slane %v108_v36, 7  ;;  %v2324_v46 = vld [vmem:[#allocation5 + $0x88] sm:$0xff]   ;;  %v2332_v47 = vld [vmem:[#allocation5 + $0x38] sm:$0xff]  }
  0x63   :  { %2179 = vmatpush3.bf16.msra.mxu0 %v2305_v2  ;;  %v400_v48 = vsel %vm397_vm4, %v393_v40, %v394_v41  ;;  %vm2745_vm7 = vmpackc.low %vm2566_vm2, %vm402_vm5  ;;  %vm404_vm8 = vcmp.ge.s32.totalorder %v2736_v39, 2  ;;  %v395_v53 = vrot.slane %v108_v36, 6  ;;  %v2327_v54 = vld [vmem:[#allocation5 + $0x90] sm:$0xff]   ;;  %v2330_v59 = vld [vmem:[#allocation5 + $0x98] sm:$0xff]   ;;  %vm1086_vm12 = vcmp.ge.s32.totalorder %v2712_v17, 4 }
  0x64   :  { %2180 = vmatprep.subr.bf16.mxu0 %v2306_v5  ;;  %2017 = vmatpush3.bf16.msra.mxu1 %v2315_v11  ;;  %v420_v32 = vsel %vm416_vm0, %v415_v27, %v412_v23  ;;  %v401_v49 = vsel %vm397_vm4, %v396_v42, %v393_v40  ;;  %v417_v51 = vsel %vm416_vm0, %v414_v44, %v415_v27  ;;  %vm2756_vm9 = vmpackc.low %vm2566_vm2, %vm423_vm6  ;;  %v2333_v62 = vld [vmem:[#allocation5 + $0xa0] sm:$0xff]   ;;  %v2334_v0 = vld [vmem:[#allocation5 + $0xa8] sm:$0xff]   ;;  %vm1088_vm14 = vcmp.ge.s32.totalorder %v2736_v39, 4 }
  0x65   :  { %2018 = vmatprep.subr.bf16.mxu1 %v2317_v13  ;;  %v1850_v35 = vpack.c.bf16 %v419_v28, %v420_v32  ;;  %v418_v52 = vsel %vm416_vm0, %v413_v24, %v414_v44  ;;  %v1853_v56 = vpack.c.bf16 %v400_v48, %v401_v49  ;;  %vm2762_vm10 = vmpackc.low %vm2566_vm2, %vm404_vm8  ;;  %v398_v60 = vsel %vm397_vm4, %v395_v53, %v396_v42  ;;  %v2335_v1 = vld [vmem:[#allocation5 + $0xb0] sm:$0xff]   ;;  %v2336_v2 = vld [vmem:[#allocation5 + $0xb8] sm:$0xff]  }
  0x66   :  { %v1856_v57 = vpack.c.bf16 %v417_v51, %v418_v52  ;;  %v399_v61 = vsel %vm397_vm4, %v394_v41, %v395_v53  ;;  %v2337_v3 = vld [vmem:[#allocation7 + $0x80] sm:$0xff]   ;;  %v2340_v6 = vld [vmem:[#allocation7 + $0x88] sm:$0xff]   ;;  %v2344_v10 = vld [vmem:[#allocation7 + $0x50] sm:$0xff]  }
  0x67   :  { %2181 = vmatpush3.bf16.msra.mxu0 %v2306_v5  ;;  %1851 = vmatprep.mubr.msk.bf16.mxu1 %vm2728_vm3, %v1850_v35  ;;  %v1859_v63 = vpack.c.bf16 %v398_v60, %v399_v61  ;;  %v2338_v4 = vld [vmem:[#allocation7 + $0x40] sm:$0xff]   ;;  %v2341_v7 = vld [vmem:[#allocation7 + $0x48] sm:$0xff]   ;;  %v2345_v11 = vld [vmem:[#allocation7 + $0x10] sm:$0xff]  }
  0x68   :  { %2182 = vmatprep.subr.bf16.mxu0 %v2307_v9  ;;  %2019 = vmatpush3.bf16.msra.mxu1 %v2318_v15  ;;  %v2339_v5 = vld [vmem:[#allocation7] sm:$0xff]   ;;  %v2342_v8 = vld [vmem:[#allocation7 + $0x8] sm:$0xff]   ;;  %v2346_v13 = vld [vmem:[#allocation7 + $0x98] sm:$0xff]  }
  0x69   :  { %2020 = vmatprep.subr.bf16.mxu1 %v2322_v22  ;;  %v2348_v15 = vld [vmem:[#allocation7 + $0x18] sm:$0xff]   ;;  %v2350_v18 = vld [vmem:[#allocation7 + $0x60] sm:$0xff]   ;;  %v2353_v21 = vld [vmem:[#allocation7 + $0x68] sm:$0xff]  }
  0x6a   :  { %v2351_v19 = vld [vmem:[#allocation7 + $0x20] sm:$0xff]   ;;  %v2354_v22 = vld [vmem:[#allocation7 + $0x28] sm:$0xff]   ;;  %v2355_v23 = vld [vmem:[#allocation7 + $0xb0] sm:$0xff]  }
  0x6b   :  { %2183 = vmatpush3.bf16.msra.mxu0 %v2307_v9  ;;  %v2343_v9 = vld [vmem:[#allocation7 + $0x90] sm:$0xff]   ;;  %v2359_v27 = vld [vmem:[#allocation7 + $0x78] sm:$0xff]   ;;  %v2367_v33 = vld [vmem:[#allocation5 + $0xc8] sm:$0xff]  }
  0x6c   :  { %2184 = vmatprep.subr.bf16.mxu0 %v2310_v14  ;;  %2021 = vmatpush3.bf16.msra.mxu1 %v2323_v26  ;;  %v2356_v24 = vld [vmem:[#allocation7 + $0x70] sm:$0xff]   ;;  %v2358_v26 = vld [vmem:[#allocation7 + $0xb8] sm:$0xff]   ;;  %vm2857_vm13 = vmpackc.low %vm2566_vm2, %vm1086_vm12 }
  0x6d   :  { %2022 = vmatprep.subr.bf16.mxu1 %v2325_v30  ;;  %v2360_v28 = vld [vmem:[#allocation7 + $0x38] sm:$0xff]   ;;  %v1824_v48 = vld [vmem:[%s2937_s2] ss:$0 sm:$0xff]  ;;  %vm2877_vm15 = vmpackc.low %vm2566_vm2, %vm1088_vm14 }
  0x6e   :  { %v2369_v55 = vld [vmem:[#allocation5 + $0x158] sm:$0xff]   ;;  %v2392_v39 = vld [vmem:[#allocation7 + $0x110] sm:$0xff]   ;;  %v2413_v50 = vld [vmem:[#allocation10 + $0x20] sm:$0xff]  }
  0x6f   :  { %2185 = vmatpush3.bf16.msra.mxu0 %v2310_v14  ;;  %v2347_v14 = vld [vmem:[#allocation7 + $0x58] sm:$0xff]   ;;  %v2411_v12 = vld [vmem:[#allocation10 + $0x10] sm:$0xff]  }
  0x70   :  { %2186 = vmatprep.subr.bf16.mxu0 %v2313_v25  ;;  %2023 = vmatpush3.bf16.msra.mxu1 %v2326_v34  ;;  %v2415_v58 = vld [vmem:[#allocation10 + $0x30] sm:$0xff]  }
  0x71   :  { %2024 = vmatprep.subr.bf16.mxu1 %v2328_v37 }
  0x73   :  { %2187 = vmatpush3.bf16.msra.mxu0 %v2313_v25  ;;  %v2357_v25 = vld [vmem:[#allocation7 + $0x30] sm:$0xff]  }
  0x74   :  { %2188 = vmatprep.subr.bf16.mxu0 %v2316_v29  ;;  %2025 = vmatpush3.bf16.msra.mxu1 %v2329_v43 }
  0x75   :  { %2026 = vmatprep.subr.bf16.mxu1 %v2331_v45 }
  0x77   :  { %2189 = vmatpush3.bf16.msra.mxu0 %v2316_v29  ;;  %v2361_v29 = vld [vmem:[#allocation5 + $0x140] sm:$0xff]  }
  0x78   :  { %2194 = vmatprep.subr.bf16.mxu0 %v2321_v38  ;;  %2027 = vmatpush3.bf16.msra.mxu1 %v2332_v47 }
  0x79   :  { %2050 = vmatprep.subr.bf16.mxu1 %v2338_v4 }
  0x7a   :  { %2191 = vmatmul.mubr.bf16.vlgmr.msra.gmra.mrb[0].mxu0 %v2716_v20 }
  0x7b   :  { %2195 = vmatpush3.bf16.msra.mxu0 %v2321_v38  ;;  %2210 = vmatprep.mubr.bf16.mxu0 %v2709_v16  ;;  %v2349_v16 = vld [vmem:[#allocation7 + $0xa0] sm:$0xff]  }
  0x7c   :  { %2196 = vmatprep.subr.bf16.mxu0 %v2324_v46  ;;  %1854 = vmatmul.mubr.msk.bf16.vlgmr.msra.gmra.mrb[0].mxu1 %vm2745_vm7, %v1853_v56 }
  0x7d   :  { %1857 = vmatprep.mubr.msk.bf16.mxu1 %vm2756_vm9, %v1856_v57  ;;  %2051 = vmatpush3.bf16.msra.mxu1 %v2339_v5 }
  0x7e   :  { %2052 = vmatprep.subr.bf16.mxu1 %v2341_v7 }
  0x7f   :  { %2197 = vmatpush3.bf16.msra.mxu0 %v2324_v46 }
  0x80   :  { %2198 = vmatprep.subr.bf16.mxu0 %v2327_v54 }
  0x81   :  { %2053 = vmatpush3.bf16.msra.mxu1 %v2342_v8 }
  0x82   :  { %2054 = vmatprep.subr.bf16.mxu1 %v2344_v10 }
  0x83   :  { %2199 = vmatpush3.bf16.msra.mxu0 %v2327_v54 }
  0x84   :  { %2200 = vmatprep.subr.bf16.mxu0 %v2330_v59  ;;  %1860 = vmatmul.mubr.msk.bf16.gmra.mrb[4].mxu1 %vm2762_vm10, %v1859_v63 }
  0x85   :  { %2055 = vmatpush3.bf16.msra.mxu1 %v2345_v11 }
  0x86   :  { %2056 = vmatprep.subr.bf16.mxu1 %v2347_v14 }
  0x87   :  { %2201 = vmatpush3.bf16.msra.mxu0 %v2330_v59 }
  0x88   :  { %2202 = vmatprep.subr.bf16.mxu0 %v2333_v62 }
  0x89   :  { %2057 = vmatpush3.bf16.msra.mxu1 %v2348_v15 }
  0x8a   :  { %2058 = vmatprep.subr.bf16.mxu1 %v2350_v18 }
  0x8b   :  { %2203 = vmatpush3.bf16.msra.mxu0 %v2333_v62 }
  0x8c   :  { %2204 = vmatprep.subr.bf16.mxu0 %v2334_v0 }
  0x8d   :  { %2059 = vmatpush3.bf16.msra.mxu1 %v2351_v19 }
  0x8e   :  { %2060 = vmatprep.subr.bf16.mxu1 %v2353_v21 }
  0x8f   :  { %2205 = vmatpush3.bf16.msra.mxu0 %v2334_v0 }
  0x90   :  { %2206 = vmatprep.subr.bf16.mxu0 %v2335_v1 }
  0x91   :  { %2061 = vmatpush3.bf16.msra.mxu1 %v2354_v22 }
  0x92   :  { %2062 = vmatprep.subr.bf16.mxu1 %v2356_v24 }
  0x93   :  { %2207 = vmatpush3.bf16.msra.mxu0 %v2335_v1 }
  0x94   :  { %2208 = vmatprep.subr.bf16.mxu0 %v2336_v2 }
  0x95   :  { %2063 = vmatpush3.bf16.msra.mxu1 %v2357_v25 }
  0x96   :  { %2064 = vmatprep.subr.bf16.mxu1 %v2359_v27 }
  0x97   :  { %2209 = vmatpush3.bf16.msra.mxu0 %v2336_v2 }
  0x98   :  { %2214 = vmatprep.subr.bf16.mxu0 %v2337_v3 }
  0x99   :  { %2065 = vmatpush3.bf16.msra.mxu1 %v2360_v28  ;;  %v2362_v28 = vld [vmem:[#allocation5 + $0x100] sm:$0xff]  }
  0x9a   :  { %2211 = vmatmul.mubr.bf16.vlgmr.msra.gmra.mrb[4].mxu0 %v2716_v20  ;;  %v2352_v20 = vld [vmem:[#allocation7 + $0xa8] sm:$0xff]   ;;  %2088 = vmatprep.subr.bf16.mxu1 %v2362_v28 }
  0x9b   :  { %2215 = vmatpush3.bf16.msra.mxu0 %v2337_v3 }
  0x9c   :  { %2216 = vmatprep.subr.bf16.mxu0 %v2340_v6 }
  0x9f   :  { %2217 = vmatpush3.bf16.msra.mxu0 %v2340_v6 }
  0xa0   :  { %2218 = vmatprep.subr.bf16.mxu0 %v2343_v9 }
  0xa3   :  { %2219 = vmatpush3.bf16.msra.mxu0 %v2343_v9 }
  0xa4   :  { %2220 = vmatprep.subr.bf16.mxu0 %v2346_v13 }
  0xa7   :  { %2221 = vmatpush3.bf16.msra.mxu0 %v2346_v13 }
  0xa8   :  { %2222 = vmatprep.subr.bf16.mxu0 %v2349_v16 }
  0xab   :  { %2223 = vmatpush3.bf16.msra.mxu0 %v2349_v16 }
  0xac   :  { %2224 = vmatprep.subr.bf16.mxu0 %v2352_v20 }
  0xaf   :  { %2225 = vmatpush3.bf16.msra.mxu0 %v2352_v20 }
  0xb0   :  { %2226 = vmatprep.subr.bf16.mxu0 %v2355_v23 }
  0xb3   :  { %2227 = vmatpush3.bf16.msra.mxu0 %v2355_v23 }
  0xb4   :  { %2228 = vmatprep.subr.bf16.mxu0 %v2358_v26 }
  0xb7   :  { %2229 = vmatpush3.bf16.msra.mxu0 %v2358_v26 }
  0xb8   :  { %2234 = vmatprep.subr.bf16.mxu0 %v2361_v29 }
 0x14d   :  { %v2777_v30 = vpop.f32.mrb[0].mxu0 }
 0x14e   :  { %v2779_v31 = vpop.f32.mrb[1].mxu0 }
 0x14f   :  { %v2781_v32 = vpop.f32.mrb[2].mxu0  ;;  %v2028_v35 = vpop.f32.mrb[0].mxu1 }
 0x150   :  { %v2783_v34 = vpop.f32.mrb[3].mxu0  ;;  %v2029_v36 = vpop.f32.mrb[1].mxu1 }
 0x151   :  { %v2030_v37 = vadd.f32 %v2029_v36, %v2028_v35  ;;  %v2031_v38 = vpop.f32.mrb[2].mxu1  ;;  %v2363_v35 = vld [vmem:[#allocation5 + $0x148] sm:$0xff]   ;;  %v2364_v36 = vld [vmem:[#allocation5 + $0xc0] sm:$0xff]  }
 0x152   :  { %v2032_v40 = vpop.f32.mrb[3].mxu1 }
 0x153   :  { %v2033_v41 = vadd.f32 %v2032_v40, %v2031_v38  ;;  %v616_v52 = vadd.f32 %v2030_v37, %v1824_v48  ;;  %v2366_v37 = vld [vmem:[#allocation5 + $0x150] sm:$0xff]  }
 0x154   :  { %v2368_v38 = vld [vmem:[#allocation5 + $0x110] sm:$0xff]  }
 0x155   :  { %v619_v60 = vadd.f32 %v2033_v41, %v1824_v48  ;;  %v2370_v40 = vld [vmem:[#allocation5 + $0xd0] sm:$0xff]   ;;  %v2371_v41 = vld [vmem:[#allocation5 + $0x118] sm:$0xff]  }
 0x157   :  { %v2034_v42 = vpop.f32.mrb[4].mxu1 }
 0x158   :  { %v2035_v43 = vpop.f32.mrb[5].mxu1 }
 0x159   :  { %v2036_v44 = vadd.f32 %v2035_v43, %v2034_v42  ;;  %v2037_v45 = vpop.f32.mrb[6].mxu1  ;;  %v2372_v42 = vld [vmem:[#allocation5 + $0x160] sm:$0xff]   ;;  %v2373_v43 = vld [vmem:[#allocation5 + $0xd8] sm:$0xff]  }
 0x15a   :  { %v2038_v46 = vpop.f32.mrb[7].mxu1 }
 0x15b   :  { %v2039_v47 = vadd.f32 %v2038_v46, %v2037_v45  ;;  %v624_v49 = vadd.f32 %v2036_v44, %v1824_v48  ;;  %v2374_v44 = vld [vmem:[#allocation5 + $0x120] sm:$0xff]   ;;  %v2375_v45 = vld [vmem:[#allocation5 + $0x168] sm:$0xff]  }
 0x15c   :  { %v2376_v46 = vld [vmem:[#allocation5 + $0xe0] sm:$0xff]  }
 0x15d   :  { %v627_v56 = vadd.f32 %v2039_v47, %v1824_v48  ;;  %v2377_v47 = vld [vmem:[#allocation5 + $0x128] sm:$0xff]   ;;  %v2378_v48 = vld [vmem:[#allocation5 + $0x170] sm:$0xff]  }
 0x16d   :  { %v2212_v51 = vpop.f32.mrb[4].mxu0 }
 0x16e   :  { %v673_v53 = vadd.f32 %v2212_v51, %v624_v49  ;;  %v664_v54 = vpop.f32.mrb[5].mxu0  ;;  %v2379_v49 = vld [vmem:[#allocation5 + $0xe8] sm:$0xff]   ;;  %v2380_v51 = vld [vmem:[#allocation5 + $0x130] sm:$0xff]  }
 0x16f   :  { %v665_v57 = vadd.f32 %v664_v54, %v616_v52  ;;  %v2213_v59 = vpop.f32.mrb[6].mxu0  ;;  %v2381_v52 = vld [vmem:[#allocation5 + $0x178] sm:$0xff]  }
 0x170   :  { %v681_v61 = vmax.f32 %v673_v53, 0.0  ;;  %v676_v62 = vadd.f32 %v2213_v59, %v627_v56  ;;  %v667_v63 = vpop.f32.mrb[7].mxu0  ;;  %v2382_v53 = vld [vmem:[#allocation5 + $0xf0] sm:$0xff]   ;;  %v2383_v54 = vld [vmem:[#allocation5 + $0x138] sm:$0xff]   ;;  %v2386_v59 = vld [vmem:[#allocation7 + $0x100] sm:$0xff]  }
 0x171   :  { %v679_v0 = vmax.f32 %v665_v57, 0.0  ;;  %v668_v1 = vadd.f32 %v667_v63, %v619_v60  ;;  %v2384_v56 = vld [vmem:[#allocation5 + $0xf8] sm:$0xff]   ;;  %v2812_v57 = vld [vmem:[#allocation7 + $0x140] sm:$0xff]  }
 0x172   :  { %v682_v2 = vmax.f32 %v676_v62, 0.0  ;;  %v687_v3 = vrot.slane %v681_v61, 6  ;;  %v701_v7 = vrot.slane %v681_v61, 7 }
 0x173   :  { %v685_v4 = vrot.slane %v679_v0, 6  ;;  %v699_v5 = vrot.slane %v679_v0, 7  ;;  %v680_v6 = vmax.f32 %v668_v1, 0.0  ;;  %v1861_v1 = vld [vmem:[%s2939_s4] ss:$0 sm:$0xff] }
 0x174   :  { %v684_v8 = vpack.c.bf16 %v682_v2, %v681_v61  ;;  %v688_v9 = vrot.slane %v682_v2, 6  ;;  %v702_v10 = vrot.slane %v682_v2, 7 }
 0x175   :  { %v686_v11 = vrot.slane %v680_v6, 6  ;;  %v700_v13 = vrot.slane %v680_v6, 7  ;;  %v683_v14 = vpack.c.bf16 %v680_v6, %v679_v0 }
 0x176   :  { %v692_v15 = vsel %vm397_vm4, %v688_v9, %v685_v4  ;;  %v706_v16 = vsel %vm416_vm0, %v702_v10, %v699_v5  ;;  %v703_v18 = vsel %vm416_vm0, %v701_v7, %v702_v10  ;;  %v689_v19 = vsel %vm397_vm4, %v687_v3, %v688_v9 }
 0x177   :  { %v691_v20 = vsel %vm397_vm4, %v685_v4, %v686_v11  ;;  %2230 = vmatprep.mubr.bf16.mxu0 %v683_v14  ;;  %v705_v21 = vsel %vm416_vm0, %v699_v5, %v700_v13  ;;  %v704_v22 = vsel %vm416_vm0, %v700_v13, %v701_v7  ;;  %v690_v23 = vsel %vm397_vm4, %v686_v11, %v687_v3 }
 0x178   :  { %v1890_v24 = vpack.c.bf16 %v691_v20, %v692_v15  ;;  %2231 = vmatmul.mubr.bf16.vlgmr.msra.gmra.mrb[8].mxu0 %v684_v8  ;;  %v1887_v25 = vpack.c.bf16 %v705_v21, %v706_v16  ;;  %v1893_v26 = vpack.c.bf16 %v703_v18, %v704_v22  ;;  %v1896_v27 = vpack.c.bf16 %v689_v19, %v690_v23  ;;  %v1813_v8 = vld [vmem:[%s2941_s6] ss:$0 sm:$0xff] }
 0x179   :  { %2235 = vmatpush3.bf16.msra.mxu0 %v2361_v29  ;;  %v2365_v29 = vld [vmem:[#allocation5 + $0x108] sm:$0xff]   ;;  %v379_v11 = vadd.f32 %v1813_v8, %v2779_v31  ;;  %v382_v18 = vadd.f32 %v1813_v8, %v2783_v34 }
 0x17a   :  { %1888 = vmatprep.mubr.msk.bf16.mxu1 %vm2728_vm3, %v1887_v25  ;;  %2236 = vmatprep.subr.bf16.mxu0 %v2363_v35 }
 0x17b   :  { %1891 = vmatmul.mubr.msk.bf16.vlgmr.msra.gmra.mrb[8].mxu1 %vm2745_vm7, %v1890_v24 }
 0x17c   :  { %1894 = vmatprep.mubr.msk.bf16.mxu1 %vm2756_vm9, %v1893_v26  ;;  %2089 = vmatpush3.bf16.msra.mxu1 %v2364_v36  ;;  %v387_v36 = vadd.f32 %v2777_v30, %v1813_v8 }
 0x17d   :  { %2237 = vmatpush3.bf16.msra.mxu0 %v2363_v35  ;;  %2090 = vmatprep.subr.bf16.mxu1 %v2365_v29 }
 0x17e   :  { %2238 = vmatprep.subr.bf16.mxu0 %v2366_v37 }
 0x180   :  { %2091 = vmatpush3.bf16.msra.mxu1 %v2367_v33  ;;  %v390_v33 = vadd.f32 %v2781_v32, %v1813_v8  ;;  %v2394_v8 = vld [vmem:[#allocation7 + $0xd0] sm:$0xff]  }
 0x181   :  { %2239 = vmatpush3.bf16.msra.mxu0 %v2366_v37  ;;  %2092 = vmatprep.subr.bf16.mxu1 %v2368_v38 }
 0x182   :  { %2240 = vmatprep.subr.bf16.mxu0 %v2369_v55 }
 0x183   :  { %1897 = vmatmul.mubr.msk.bf16.gmra.mrb[12].mxu1 %vm2762_vm10, %v1896_v27 }
 0x184   :  { %2093 = vmatpush3.bf16.msra.mxu1 %v2370_v40 }
 0x185   :  { %2241 = vmatpush3.bf16.msra.mxu0 %v2369_v55  ;;  %2094 = vmatprep.subr.bf16.mxu1 %v2371_v41 }
 0x186   :  { %2242 = vmatprep.subr.bf16.mxu0 %v2372_v42 }
 0x188   :  { %2095 = vmatpush3.bf16.msra.mxu1 %v2373_v43 }
 0x189   :  { %2243 = vmatpush3.bf16.msra.mxu0 %v2372_v42  ;;  %2096 = vmatprep.subr.bf16.mxu1 %v2374_v44 }
 0x18a   :  { %2244 = vmatprep.subr.bf16.mxu0 %v2375_v45 }
 0x18c   :  { %2097 = vmatpush3.bf16.msra.mxu1 %v2376_v46 }
 0x18d   :  { %2245 = vmatpush3.bf16.msra.mxu0 %v2375_v45  ;;  %2098 = vmatprep.subr.bf16.mxu1 %v2377_v47 }
 0x18e   :  { %2246 = vmatprep.subr.bf16.mxu0 %v2378_v48 }
 0x190   :  { %2099 = vmatpush3.bf16.msra.mxu1 %v2379_v49  ;;  %v2387_v49 = vld [vmem:[#allocation7 + $0x148] sm:$0xff]  }
 0x191   :  { %2247 = vmatpush3.bf16.msra.mxu0 %v2378_v48  ;;  %2100 = vmatprep.subr.bf16.mxu1 %v2380_v51 }
 0x192   :  { %2248 = vmatprep.subr.bf16.mxu0 %v2381_v52 }
 0x194   :  { %2101 = vmatpush3.bf16.msra.mxu1 %v2382_v53 }
 0x195   :  { %2249 = vmatpush3.bf16.msra.mxu0 %v2381_v52  ;;  %2102 = vmatprep.subr.bf16.mxu1 %v2383_v54 }
 0x196   :  { %2254 = vmatprep.subr.bf16.mxu0 %v2812_v57 }
 0x198   :  { %2103 = vmatpush3.bf16.msra.mxu1 %v2384_v56 }
 0x199   :  { %2126 = vmatprep.subr.bf16.mxu1 %v2386_v59  ;;  %v2414_v59 = vld [vmem:[#allocation10 + $0x28] sm:$0xff]  }
 0x24b   :  { %v2232_v60 = vpop.f32.mrb[8].mxu0 }
 0x24c   :  { %v946_v61 = vpop.f32.mrb[9].mxu0 }
 0x24d   :  { %v2233_v62 = vpop.f32.mrb[10].mxu0 }
 0x24e   :  { %v2066_v63 = vpop.f32.mrb[8].mxu1  ;;  %v949_v0 = vpop.f32.mrb[11].mxu0 }
 0x24f   :  { %v2067_v2 = vpop.f32.mrb[9].mxu1 }
 0x250   :  { %v2068_v3 = vadd.f32 %v2067_v2, %v2066_v63  ;;  %v2069_v4 = vpop.f32.mrb[10].mxu1  ;;  %v2416_v2 = vld [vmem:[#allocation10 + $0x38] sm:$0xff]  }
 0x251   :  { %v2070_v5 = vpop.f32.mrb[11].mxu1 }
 0x252   :  { %v898_v6 = vadd.f32 %v2068_v3, %v1861_v1  ;;  %v2071_v7 = vadd.f32 %v2070_v5, %v2069_v4  ;;  %v2389_v4 = vld [vmem:[#allocation7 + $0x108] sm:$0xff]   ;;  %v2390_v5 = vld [vmem:[#allocation7 + $0x150] sm:$0xff]  }
 0x254   :  { %v947_v9 = vadd.f32 %v946_v61, %v898_v6  ;;  %v901_v10 = vadd.f32 %v2071_v7, %v1861_v1  ;;  %v2388_v61 = vld [vmem:[#allocation7 + $0xc0] sm:$0xff]   ;;  %v2391_v6 = vld [vmem:[#allocation7 + $0xc8] sm:$0xff]   ;;  %v2393_v7 = vld [vmem:[#allocation7 + $0x158] sm:$0xff]  }
 0x256   :  { %v961_v13 = vmax.f32 %v947_v9, 0.0  ;;  %v950_v14 = vadd.f32 %v949_v0, %v901_v10  ;;  %v2072_v15 = vpop.f32.mrb[12].mxu1  ;;  %v2395_v9 = vld [vmem:[#allocation7 + $0x118] sm:$0xff]   ;;  %v2396_v10 = vld [vmem:[#allocation7 + $0x160] sm:$0xff]  }
 0x257   :  { %v2073_v16 = vpop.f32.mrb[13].mxu1 }
 0x258   :  { %v965_v19 = vadd.f32 %v961_v13, %v379_v11  ;;  %v962_v20 = vmax.f32 %v950_v14, 0.0  ;;  %v2074_v21 = vadd.f32 %v2073_v16, %v2072_v15  ;;  %v2075_v22 = vpop.f32.mrb[14].mxu1  ;;  %v2397_v11 = vld [vmem:[#allocation7 + $0xd8] sm:$0xff]   ;;  %v2398_v13 = vld [vmem:[#allocation7 + $0x120] sm:$0xff]   ;;  %v2399_v14 = vld [vmem:[#allocation7 + $0x168] sm:$0xff]  }
 0x259   :  { %v2076_v23 = vpop.f32.mrb[15].mxu1  ;;  %v2400_v15 = vld [vmem:[#allocation7 + $0xe0] sm:$0xff]   ;;  %v2401_v16 = vld [vmem:[#allocation7 + $0x128] sm:$0xff]  }
 0x25a   :  { %v966_v24 = vadd.f32 %v962_v20, %v382_v18  ;;  %v906_v25 = vadd.f32 %v2074_v21, %v1861_v1  ;;  %v2077_v26 = vadd.f32 %v2076_v23, %v2075_v22  ;;  %v2823_v27 = vmax.f32 %v965_v19, 0.0  ;;  %v2402_v18 = vld [vmem:[#allocation7 + $0x170] sm:$0xff]   ;;  %v2403_v19 = vld [vmem:[#allocation7 + $0xe8] sm:$0xff]   ;;  %v2405_v21 = vld [vmem:[#allocation7 + $0x178] sm:$0xff]  }
 0x25b   :  { %v2404_v20 = vld [vmem:[#allocation7 + $0x130] sm:$0xff]   ;;  %v2407_v23 = vld [vmem:[#allocation7 + $0x138] sm:$0xff]  }
 0x25c   :  { %v2825_v28 = vmax.f32 %v966_v24, 0.0  ;;  %v955_v35 = vadd.f32 %v2232_v60, %v906_v25  ;;  %v909_v31 = vadd.f32 %v2077_v26, %v1861_v1  ;;  %v1077_v44 = vrot.slane %v2823_v27, 4  ;;  %v2406_v22 = vld [vmem:[#allocation7 + $0xf0] sm:$0xff]   ;;  %v2408_v24 = vld [vmem:[#allocation7 + $0xf8] sm:$0xff]   ;;  %v2409_v25 = vld [vmem:[#allocation10] sm:$0xff]  }
 0x25d   :  { %v1096_v45 = vrot.slane %v2823_v27, 6 }
 0x25e   :  { %v963_v29 = vmax.f32 %v955_v35, 0.0  ;;  %v958_v37 = vadd.f32 %v2233_v62, %v909_v31  ;;  %v1075_v34 = vpack.c.bf16 %v2825_v28, %v2823_v27  ;;  %v1078_v42 = vrot.slane %v2825_v28, 4 }
 0x25f   :  { %v1097_v30 = vrot.slane %v2825_v28, 6 }
 0x260   :  { %v967_v38 = vadd.f32 %v963_v29, %v387_v36  ;;  %v964_v55 = vmax.f32 %v958_v37, 0.0  ;;  %2250 = vmatprep.mubr.bf16.mxu0 %v1075_v34  ;;  %v1084_v51 = vsel %vm1081_vm11, %v1077_v44, %v1078_v42  ;;  %v1900_v37 = vld [vmem:[%s2937_s2 + $0x1] ss:$0 sm:$0xff] }
 0x261   :  { %v1102_v52 = vsel %vm397_vm4, %v1096_v45, %v1097_v30 }
 0x262   :  { %v2831_v40 = vmax.f32 %v967_v38, 0.0  ;;  %v968_v41 = vadd.f32 %v964_v55, %v390_v33 }
 0x264   :  { %v2835_v43 = vmax.f32 %v968_v41, 0.0  ;;  %v1098_v48 = vrot.slane %v2831_v40, 6  ;;  %v1079_v0 = vrot.slane %v2831_v40, 4 }
 0x266   :  { %v1080_v32 = vrot.slane %v2835_v43, 4  ;;  %v1076_v46 = vpack.c.bf16 %v2835_v43, %v2831_v40  ;;  %v1099_v47 = vrot.slane %v2835_v43, 6  ;;  %v1101_v62 = vsel %vm397_vm4, %v1097_v30, %v1098_v48 }
 0x267   :  { %v1083_v1 = vsel %vm1081_vm11, %v1078_v42, %v1079_v0 }
 0x268   :  { %2251 = vmatmul.mubr.bf16.vlgmr.msra.gmra.mrb[12].mxu0 %v1076_v46  ;;  %v1103_v17 = vsel %vm397_vm4, %v1099_v47, %v1096_v45  ;;  %v1085_v53 = vsel %vm1081_vm11, %v1080_v32, %v1077_v44  ;;  %v1100_v54 = vsel %vm397_vm4, %v1098_v48, %v1099_v47 }
 0x269   :  { %v1926_v56 = vpack.c.bf16 %v1102_v52, %v1103_v17  ;;  %v1929_v60 = vpack.c.bf16 %v1084_v51, %v1085_v53  ;;  %2255 = vmatpush3.bf16.msra.mxu0 %v2812_v57  ;;  %v1932_v63 = vpack.c.bf16 %v1100_v54, %v1101_v62  ;;  %v1082_v57 = vsel %vm1081_vm11, %v1079_v0, %v1080_v32 }
 0x26a   :  { %2256 = vmatprep.subr.bf16.mxu0 %v2387_v49  ;;  %v1935_v3 = vpack.c.bf16 %v1082_v57, %v1083_v1 }
 0x26b   :  { %1927 = vmatprep.mubr.msk.bf16.mxu1 %vm2745_vm7, %v1926_v56 }
 0x26c   :  { %1930 = vmatmul.mubr.msk.bf16.vlgmr.msra.gmra.mrb[16].mxu1 %vm2857_vm13, %v1929_v60 }
 0x26d   :  { %1933 = vmatprep.mubr.msk.bf16.mxu1 %vm2762_vm10, %v1932_v63  ;;  %2127 = vmatpush3.bf16.msra.mxu1 %v2388_v61 }
 0x26e   :  { %2257 = vmatpush3.bf16.msra.mxu0 %v2387_v49  ;;  %2128 = vmatprep.subr.bf16.mxu1 %v2389_v4 }
 0x26f   :  { %2258 = vmatprep.subr.bf16.mxu0 %v2390_v5 }
 0x271   :  { %2129 = vmatpush3.bf16.msra.mxu1 %v2391_v6 }
 0x272   :  { %2259 = vmatpush3.bf16.msra.mxu0 %v2390_v5  ;;  %2130 = vmatprep.subr.bf16.mxu1 %v2392_v39 }
 0x273   :  { %2260 = vmatprep.subr.bf16.mxu0 %v2393_v7 }
 0x274   :  { %1936 = vmatmul.mubr.msk.bf16.gmra.mrb[20].mxu1 %vm2877_vm15, %v1935_v3 }
 0x275   :  { %2131 = vmatpush3.bf16.msra.mxu1 %v2394_v8 }
 0x276   :  { %2261 = vmatpush3.bf16.msra.mxu0 %v2393_v7  ;;  %2132 = vmatprep.subr.bf16.mxu1 %v2395_v9 }
 0x277   :  { %2262 = vmatprep.subr.bf16.mxu0 %v2396_v10 }
 0x279   :  { %2133 = vmatpush3.bf16.msra.mxu1 %v2397_v11 }
 0x27a   :  { %2263 = vmatpush3.bf16.msra.mxu0 %v2396_v10  ;;  %2134 = vmatprep.subr.bf16.mxu1 %v2398_v13 }
 0x27b   :  { %2264 = vmatprep.subr.bf16.mxu0 %v2399_v14 }
 0x27d   :  { %2135 = vmatpush3.bf16.msra.mxu1 %v2400_v15 }
 0x27e   :  { %2265 = vmatpush3.bf16.msra.mxu0 %v2399_v14  ;;  %2136 = vmatprep.subr.bf16.mxu1 %v2401_v16 }
 0x27f   :  { %2266 = vmatprep.subr.bf16.mxu0 %v2402_v18 }
 0x281   :  { %2137 = vmatpush3.bf16.msra.mxu1 %v2403_v19 }
 0x282   :  { %2267 = vmatpush3.bf16.msra.mxu0 %v2402_v18  ;;  %2138 = vmatprep.subr.bf16.mxu1 %v2404_v20 }
 0x283   :  { %2268 = vmatprep.subr.bf16.mxu0 %v2405_v21 }
 0x285   :  { %2139 = vmatpush3.bf16.msra.mxu1 %v2406_v22  ;;  %v2410_v22 = vld [vmem:[#allocation10 + $0x8] sm:$0xff]  }
 0x286   :  { %2269 = vmatpush3.bf16.msra.mxu0 %v2405_v21  ;;  %2140 = vmatprep.subr.bf16.mxu1 %v2407_v23  ;;  %v2412_v23 = vld [vmem:[#allocation10 + $0x18] sm:$0xff]  }
 0x289   :  { %2141 = vmatpush3.bf16.msra.mxu1 %v2408_v24 }
 0x28a   :  { %2274 = vmatprep.subr.bf16.mxu1 %v2409_v25 }
 0x33b   :  { %v2252_v26 = vpop.f32.mrb[12].mxu0 }
 0x33c   :  { %v1343_v35 = vpop.f32.mrb[13].mxu0 }
 0x33d   :  { %v2253_v31 = vpop.f32.mrb[14].mxu0 }
 0x33e   :  { %v1346_v36 = vpop.f32.mrb[15].mxu0 }
 0x33f   :  { %v2104_v29 = vpop.f32.mrb[16].mxu1 }
 0x340   :  { %v2105_v34 = vpop.f32.mrb[17].mxu1 }
 0x341   :  { %v2106_v33 = vadd.f32 %v2105_v34, %v2104_v29  ;;  %v2107_v38 = vpop.f32.mrb[18].mxu1 }
 0x342   :  { %v2108_v55 = vpop.f32.mrb[19].mxu1 }
 0x343   :  { %v1295_v41 = vadd.f32 %v2106_v33, %v1900_v37  ;;  %v2109_v42 = vadd.f32 %v2108_v55, %v2107_v38 }
 0x345   :  { %v1344_v30 = vadd.f32 %v1343_v35, %v1295_v41  ;;  %v1298_v44 = vadd.f32 %v2109_v42, %v1900_v37 }
 0x347   :  { %v1358_v45 = vmax.f32 %v1344_v30, 0.0  ;;  %v1347_v32 = vadd.f32 %v1346_v36, %v1298_v44  ;;  %v2110_v46 = vpop.f32.mrb[20].mxu1  ;;  %v1937_v36 = vld [vmem:[%s2939_s4 + $0x1] ss:$0 sm:$0xff] }
 0x348   :  { %v2111_v47 = vpop.f32.mrb[21].mxu1 }
 0x349   :  { %v1359_v48 = vmax.f32 %v1347_v32, 0.0  ;;  %v2112_v49 = vadd.f32 %v2111_v47, %v2110_v46  ;;  %v2113_v51 = vpop.f32.mrb[22].mxu1  ;;  %v1364_v52 = vrot.slane %v1358_v45, 4  ;;  %v1378_v17 = vrot.slane %v1358_v45, 6 }
 0x34a   :  { %v2114_v53 = vpop.f32.mrb[23].mxu1 }
 0x34b   :  { %v1365_v54 = vrot.slane %v1359_v48, 4  ;;  %v1379_v56 = vrot.slane %v1359_v48, 6  ;;  %v1303_v60 = vadd.f32 %v2112_v49, %v1900_v37  ;;  %v2115_v61 = vadd.f32 %v2114_v53, %v2113_v51 }
 0x34c   :  { %v1362_v62 = vpack.c.bf16 %v1359_v48, %v1358_v45 }
 0x34d   :  { %v1370_v63 = vsel %vm1081_vm11, %v1364_v52, %v1365_v54  ;;  %v1352_v0 = vadd.f32 %v2252_v26, %v1303_v60  ;;  %v1306_v57 = vadd.f32 %v2115_v61, %v1900_v37  ;;  %v1384_v1 = vsel %vm397_vm4, %v1378_v17, %v1379_v56 }
 0x34e   :  { %2270 = vmatprep.mubr.bf16.mxu0 %v1362_v62 }
 0x34f   :  { %v1360_v3 = vmax.f32 %v1352_v0, 0.0  ;;  %v1355_v4 = vadd.f32 %v2253_v31, %v1306_v57 }
 0x351   :  { %v1366_v5 = vrot.slane %v1360_v3, 4  ;;  %v1380_v6 = vrot.slane %v1360_v3, 6  ;;  %v1361_v39 = vmax.f32 %v1355_v4, 0.0 }
 0x353   :  { %v1367_v7 = vrot.slane %v1361_v39, 4  ;;  %v1381_v8 = vrot.slane %v1361_v39, 6  ;;  %v1363_v9 = vpack.c.bf16 %v1361_v39, %v1360_v3  ;;  %v1383_v10 = vsel %vm397_vm4, %v1379_v56, %v1380_v6 }
 0x354   :  { %v1369_v11 = vsel %vm1081_vm11, %v1365_v54, %v1366_v5 }
 0x355   :  { %v1371_v13 = vsel %vm1081_vm11, %v1367_v7, %v1364_v52  ;;  %2271 = vmatmul.mubr.bf16.vlgmr.msra.gmra.mrb[16].mxu0 %v1363_v9  ;;  %v1385_v14 = vsel %vm397_vm4, %v1381_v8, %v1378_v17  ;;  %v1382_v15 = vsel %vm397_vm4, %v1380_v6, %v1381_v8  ;;  %v1368_v16 = vsel %vm1081_vm11, %v1366_v5, %v1367_v7 }
 0x356   :  { %v1966_v18 = vpack.c.bf16 %v1370_v63, %v1371_v13  ;;  %v1963_v19 = vpack.c.bf16 %v1384_v1, %v1385_v14  ;;  %v1969_v20 = vpack.c.bf16 %v1382_v15, %v1383_v10  ;;  %v1972_v21 = vpack.c.bf16 %v1368_v16, %v1369_v11 }
 0x358   :  { %1964 = vmatprep.mubr.msk.bf16.mxu1 %vm2745_vm7, %v1963_v19 }
 0x359   :  { %1967 = vmatmul.mubr.msk.bf16.vlgmr.msra.gmra.mrb[24].mxu1 %vm2857_vm13, %v1966_v18 }
 0x35a   :  { %1970 = vmatprep.mubr.msk.bf16.mxu1 %vm2762_vm10, %v1969_v20  ;;  %2275 = vmatpush3.bf16.msra.mxu1 %v2409_v25 }
 0x35b   :  { %2276 = vmatprep.subr.bf16.mxu1 %v2410_v22 }
 0x35e   :  { %2277 = vmatpush3.bf16.msra.mxu1 %v2410_v22 }
 0x35f   :  { %2278 = vmatprep.subr.bf16.mxu1 %v2411_v12 }
 0x361   :  { %1973 = vmatmul.mubr.msk.bf16.gmra.mrb[28].mxu1 %vm2877_vm15, %v1972_v21 }
 0x362   :  { %2279 = vmatpush3.bf16.msra.mxu1 %v2411_v12 }
 0x363   :  { %2280 = vmatprep.subr.bf16.mxu1 %v2412_v23 }
 0x366   :  { %2281 = vmatpush3.bf16.msra.mxu1 %v2412_v23 }
 0x367   :  { %2282 = vmatprep.subr.bf16.mxu1 %v2413_v50 }
 0x36a   :  { %2283 = vmatpush3.bf16.msra.mxu1 %v2413_v50 }
 0x36b   :  { %2284 = vmatprep.subr.bf16.mxu1 %v2414_v59 }
 0x36e   :  { %2285 = vmatpush3.bf16.msra.mxu1 %v2414_v59 }
 0x36f   :  { %2286 = vmatprep.subr.bf16.mxu1 %v2415_v58 }
 0x372   :  { %2287 = vmatpush3.bf16.msra.mxu1 %v2415_v58 }
 0x373   :  { %2288 = vmatprep.subr.bf16.mxu1 %v2416_v2 }
 0x376   :  { %2289 = vmatpush3.bf16.msra.mxu1 %v2416_v2 }
 0x428   :  { %v2272_v24 = vpop.f32.mrb[16].mxu0 }
 0x429   :  { %v1625_v25 = vpop.f32.mrb[17].mxu0 }
 0x42a   :  { %v2273_v26 = vpop.f32.mrb[18].mxu0 }
 0x42b   :  { %v1628_v35 = vpop.f32.mrb[19].mxu0 }
 0x42c   :  { %v2142_v31 = vpop.f32.mrb[24].mxu1 }
 0x42d   :  { %v2143_v29 = vpop.f32.mrb[25].mxu1 }
 0x42e   :  { %v2144_v37 = vadd.f32 %v2143_v29, %v2142_v31  ;;  %v2145_v34 = vpop.f32.mrb[26].mxu1 }
 0x42f   :  { %v2146_v33 = vpop.f32.mrb[27].mxu1 }
 0x430   :  { %v1577_v38 = vadd.f32 %v2144_v37, %v1937_v36  ;;  %v2147_v55 = vadd.f32 %v2146_v33, %v2145_v34 }
 0x432   :  { %v1626_v41 = vadd.f32 %v1625_v25, %v1577_v38  ;;  %v1580_v42 = vadd.f32 %v2147_v55, %v1937_v36 }
 0x434   :  { %v1640_v30 = vmax.f32 %v1626_v41, 0.0  ;;  %v1629_v44 = vadd.f32 %v1628_v35, %v1580_v42  ;;  %v2148_v45 = vpop.f32.mrb[28].mxu1 }
 0x435   :  { %v2149_v32 = vpop.f32.mrb[29].mxu1 }
 0x436   :  { %v1641_v46 = vmax.f32 %v1629_v44, 0.0  ;;  %v2150_v47 = vadd.f32 %v2149_v32, %v2148_v45  ;;  %v2151_v48 = vpop.f32.mrb[30].mxu1  ;;  %v1644_v49 = vadd.f32 %v1640_v30, %v2823_v27 }
 0x437   :  { %v2152_v51 = vpop.f32.mrb[31].mxu1 }
 0x438   :  { %v1585_v52 = vadd.f32 %v2150_v47, %v1937_v36  ;;  %v2153_v17 = vadd.f32 %v2152_v51, %v2151_v48  ;;  %v1645_v53 = vadd.f32 %v1641_v46, %v2825_v28  ;;  %v1648_v60 = vmax.f32 %v1644_v49, 0.0  ;;  %v1974_v28 = vld [vmem:[%s2943_s8] ss:$0 sm:$0xff] }
 0x43a   :  { %v1634_v54 = vadd.f32 %v2272_v24, %v1585_v52  ;;  %v1588_v56 = vadd.f32 %v2153_v17, %v1937_v36  ;;  %v1649_v61 = vmax.f32 %v1645_v53, 0.0 }
 0x43c   :  { %v1642_v62 = vmax.f32 %v1634_v54, 0.0  ;;  %v1637_v63 = vadd.f32 %v2273_v26, %v1588_v56  ;;  %v1652_v0 = vpack.c.bf16 %v1649_v61, %v1648_v60 }
 0x43e   :  { %v1646_v57 = vadd.f32 %v1642_v62, %v2831_v40  ;;  %v1643_v1 = vmax.f32 %v1637_v63, 0.0  ;;  %2290 = vmatprep.mubr.bf16.mxu1 %v1652_v0 }
 0x440   :  { %v1647_v3 = vadd.f32 %v1643_v1, %v2835_v43  ;;  %v1650_v4 = vmax.f32 %v1646_v57, 0.0 }
 0x442   :  { %v1651_v27 = vmax.f32 %v1647_v3, 0.0 }
 0x444   :  { %v1653_v5 = vpack.c.bf16 %v1651_v27, %v1650_v4 }
 0x446   :  { %2291 = vmatmul.mubr.bf16.vlgmr.msra.gmra.mrb[32].mxu1 %v1653_v5 }
 0x519   :  { %v2292_v6 = vpop.f32.mrb[32].mxu1 }
 0x51a   :  { %v1759_v39 = vpop.f32.mrb[33].mxu1  ;;  %v1768_v8 = vadd.f32 %v2292_v6, %v1974_v28 }
 0x51b   :  { %v2293_v7 = vpop.f32.mrb[34].mxu1  ;;  %v1760_v40 = vadd.f32 %v1974_v28, %v1759_v39 }
 0x51c   :  { %v1771_v9 = vadd.f32 %v2293_v7, %v1974_v28  ;;  %v1762_v10 = vpop.f32.mrb[35].mxu1 }
 0x51d   :  { %v1763_v11 = vadd.f32 %v1974_v28, %v1762_v10 }
 0x51e   :  { %v1999_v13 = vpack.c.bf16 %v1771_v9, %v1768_v8 }
 0x51f   :  { %v1994_v43 = vpack.c.bf16 %v1763_v11, %v1760_v40 }
 0x520   :  { %2001 = vst [vmem:[#allocation11 + $0x8] sm:$0xff] %v1999_v13  }
 0x521   :  { %1995 = vst [vmem:[#allocation11] sm:$0xff] %v1994_v43  }
 0x522   :  { %2540 = shalt.err (!%p2537_p2)
}
 0x523   :  { %s2541_s18 = scalar_lea.hbm %s2944_s9, 256 }
 0x524   :  { %p2542_p3 = scmp.ne.s32.totalorder %s2944_s9, %s2541_s18  ;;  %p2545_p4 = scmp.lt.u32.totalorder %s2541_s18, %s2944_s9 }
 0x526   :  { %p2547_p5 = pnand %p2545_p4, %p2542_p3 }
 0x528   :  { %2550 = shalt.err (!%p2547_p5)
}
 0x529   :  { %1805 = dma.vmem_to_hbm [thread:$0]  %s1800_s0, 256, %s2944_s9, [#allocation4], %s2561_s21, %s2561_s21, %s2562_s22  }
 0x52a   :  { %2557 = dma.done.wait [#allocation4], 256  }
 0x52b   :  { %2558 = vsyncadd [#allocation4], 4294967040 }
 0x52c   :  { %1809 = vsyncpa [#allocation3], 1 }
 0x52d   :  { %1810 = vsyncpa [#allocation6], 1 }
 0x52e   :  { %1811 = vsyncpa [#allocation9], 1 }
 0x52f   :  { %1812 = vsyncpa [#allocation4], 1 }

</bundles_post_ra>
